<compile_context>
chip_gen: v7x
topology: tpu7x:2x2x1
jax: 0.10.0
libtpu: 0.0.40
codegen_flags: <defaults>
</compile_context>

<pallas_src>
import jax
import jax.numpy as jnp
from jax import lax
from jax.experimental import pallas as pl
from jax.experimental.pallas import tpu as pltpu

LRELU_SLOPE = 0.1


def get_padding(kernel_size, dilation=1):
    return int((kernel_size * dilation - dilation) / 2)


def _round_up(n, m):
    return ((n + m - 1) // m) * m


# ------------------------------------------------------------------ per-layer sizing

def _vmem_capacity_bytes():
    try:
        return int(pltpu.get_tpu_info().vmem_capacity_bytes)
    except Exception:
        return 64 << 20          # conservative (v7x-sized) fallback


def _conv_footprint_bytes(t, Cin_p, Cout_p, K, n_res, itemsize, stacked):
    """Rough per-grid-step VMEM footprint (double-buffered blocks + in-kernel temps)."""
    db = 2
    f = Cin_p * t * itemsize * db                 # main input tile
    f += Cin_p * 128 * itemsize * db              # halo tile
    f += K * Cout_p * Cin_p * itemsize * db       # weights (conservatively x2)
    f += Cout_p * 8 * db                          # bias
    f += n_res * Cout_p * t * itemsize * db       # fused residual operands
    f += Cout_p * t * itemsize * db               # output tile
    f += 2 * Cin_p * (t + 128) * itemsize         # concat window (+ leaky copy)
    f += Cout_p * t * 4                           # f32 accumulator
    if stacked:
        f += K * Cin_p * t * itemsize             # stacked shifted-window operand
    else:
        f += 2 * Cin_p * t * itemsize             # a couple of shifted-slice temps
    return f


def _choose_tile_and_vmem(T_out, Cin_p, Cout_p, K, n_res, itemsize, *, stacked,
                          fixed_tile=None):
    phys = _vmem_capacity_bytes()
    budget = min(phys // 3, 44 << 20)
    if fixed_tile is not None:
        t_tile = fixed_tile
    else:
        t_tile = 128
        for t in (256, 512, 1024, 2048, 4096, 8192):
            if _conv_footprint_bytes(t, Cin_p, Cout_p, K, n_res, itemsize,
                                     stacked) <= budget:
                t_tile = t
        t_tile = min(t_tile, _round_up(max(T_out, 1), 128))
    foot = _conv_footprint_bytes(t_tile, Cin_p, Cout_p, K, n_res, itemsize, stacked)
    vmem_limit = int(foot * 1.5) + (4 << 20)
    vmem_limit = min(vmem_limit, max(32 << 20, phys - (8 << 20)))
    vmem_limit = max(32 << 20, vmem_limit)
    return t_tile, vmem_limit


# ------------------------------------------------------------------ Pallas conv1d kernel

def _make_conv1d_kernel(*, K, dilation, t_tile, pre_slope, post_tanh, n_res, out_scale,
                        per_tap):
    """Kernel refs: x_main, x_halo, w, bias, [res_0, [res_1]], out."""

    def kernel(*refs):
        xm_ref, xh_ref, w_ref, b_ref = refs[:4]
        res_refs = refs[4:4 + n_res]
        o_ref = refs[4 + n_res]

        # (Cin_p, t_tile + 128) window covering this tile plus the kernel halo.
        x = jnp.concatenate([xm_ref[0], xh_ref[0]], axis=-1)
        if pre_slope is not None:
            x = jnp.where(x >= 0, x, jnp.asarray(pre_slope, x.dtype) * x)

        if per_tap:
            # Wide layers: K accumulated taps into the f32 accumulator; contraction
            # depth Cin_p (>=128) already fills the MXU, and we never materialize the
            # (K*Cin_p, t_tile) stacked operand.
            acc = jnp.dot(w_ref[0], x[:, 0:t_tile], preferred_element_type=jnp.float32)
            for k in range(1, K):
                acc = acc + jnp.dot(w_ref[k],
                                    x[:, k * dilation:k * dilation + t_tile],
                                    preferred_element_type=jnp.float32)
        else:
            # Narrow layers: stack the K shifted windows -> one big-contraction matmul.
            xs = jnp.concatenate(
                [x[:, k * dilation:k * dilation + t_tile] for k in range(K)], axis=0)
            acc = jnp.dot(w_ref[...], xs, preferred_element_type=jnp.float32)

        acc = acc + b_ref[...]                   # (Cout_p, 1) bias broadcast over lanes
        for rr in res_refs:                      # fused residual / accumulator adds (f32)
            acc = acc + rr[0].astype(jnp.float32)
        if out_scale != 1.0:                     # fused /num_kernels scale
            acc = acc * jnp.float32(out_scale)
        if post_tanh:
            acc = jnp.tanh(acc)
        o_ref[0] = acc.astype(o_ref.dtype)

    return kernel


def conv1d_pallas(x, w, b, *, dilation=1, padding=0, pre_slope=None, post_tanh=False,
                  residuals=(), out_scale=1.0, compute_dtype=jnp.float32, t_tile=None):
    """Stride-1 dilated Conv1d.  x: (B, Cin, T), w: (Cout, Cin, K), b: (Cout,).

    Optional fusions: leaky-relu pre-activation (pre_slope), residual adds (residuals),
    output scale, tanh epilogue.  Returns (B, Cout, T_out) in compute_dtype.
    """
    if isinstance(padding, int):
        padding = (padding, padding)
    pad_l, pad_r = padding
    B, Cin, T = x.shape
    Cout, Cin_w, K = w.shape
    assert Cin_w == Cin
    halo = dilation * (K - 1)
    assert halo <= 128, "kernel halo must fit in one 128-lane chunk"
    T_out = T + pad_l + pad_r - halo
    assert T_out > 0, "conv output length must be positive"

    Cin_p = _round_up(Cin, 8)
    Cout_p = _round_up(Cout, 8)
    cd = compute_dtype
    itemsize = jnp.dtype(cd).itemsize
    per_tap = Cin_p >= 128

    if t_tile is None:
        t_tile, vmem_limit = _choose_tile_and_vmem(
            T_out, Cin_p, Cout_p, K, len(residuals), itemsize, stacked=not per_tap)
    else:
        t_tile = min(_round_up(t_tile, 128), _round_up(T_out, 128))
        _, vmem_limit = _choose_tile_and_vmem(
            T_out, Cin_p, Cout_p, K, len(residuals), itemsize, stacked=not per_tap,
            fixed_tile=t_tile)

    n_t = pl.cdiv(T_out, t_tile)
    T_out_pad = n_t * t_tile
    Tpad_total = T_out_pad + 128                 # extra 128-lane chunk for the halo

    # Pad input: left conv pad, channel pad to 8, right pad up to Tpad_total (zeros).
    x = x.astype(cd)
    xp = jnp.pad(x, ((0, 0), (0, Cin_p - Cin), (pad_l, Tpad_total - T - pad_l)))

    wp = jnp.pad(w.astype(cd), ((0, Cout_p - Cout), (0, Cin_p - Cin), (0, 0)))
    bp = jnp.pad(b.astype(jnp.float32), (0, Cout_p - Cout)).reshape(Cout_p, 1)
    if per_tap:
        w_op = jnp.transpose(wp, (2, 0, 1))                       # (K, Cout_p, Cin_p)
        w_spec = pl.BlockSpec((K, Cout_p, Cin_p), lambda bb, tt: (0, 0, 0))
    else:
        w_op = jnp.transpose(wp, (0, 2, 1)).reshape(Cout_p, K * Cin_p)
        w_spec = pl.BlockSpec((Cout_p, K * Cin_p), lambda bb, tt: (0, 0))

    res_ops = []
    for r in residuals:
        rB, rC, rT = r.shape
        assert rB == B and rC == Cout and rT == T_out
        res_ops.append(jnp.pad(r.astype(cd),
                               ((0, 0), (0, Cout_p - rC), (0, T_out_pad - rT))))

    kernel = _make_conv1d_kernel(K=K, dilation=dilation, t_tile=t_tile,
                                 pre_slope=pre_slope, post_tanh=post_tanh,
                                 n_res=len(res_ops), out_scale=out_scale,
                                 per_tap=per_tap)

    hb = t_tile // 128
    in_specs = [
        # main time tile of the input
        pl.BlockSpec((1, Cin_p, t_tile), lambda bb, tt: (bb, 0, tt)),
        # 128-lane halo chunk immediately after the main tile
        pl.BlockSpec((1, Cin_p, 128), lambda bb, tt: (bb, 0, (tt + 1) * hb)),
        # weights / bias: constant index_map along the T grid axis -> stay VMEM-resident
        w_spec,
        pl.BlockSpec((Cout_p, 1), lambda bb, tt: (0, 0)),
    ]
    operands = [xp, xp, w_op, bp]
    for rp in res_ops:
        in_specs.append(pl.BlockSpec((1, Cout_p, t_tile), lambda bb, tt: (bb, 0, tt)))
        operands.append(rp)

    out = pl.pallas_call(
        kernel,
        out_shape=jax.ShapeDtypeStruct((B, Cout_p, T_out_pad), cd),
        grid=(B, n_t),
        in_specs=in_specs,
        out_specs=pl.BlockSpec((1, Cout_p, t_tile), lambda bb, tt: (bb, 0, tt)),
        compiler_params=pltpu.CompilerParams(
            dimension_semantics=("parallel", "parallel"),
            vmem_limit_bytes=vmem_limit),
    )(*operands)

    if Cout_p != Cout or T_out_pad != T_out:
        out = out[:, :Cout, :T_out]
    return out


# ------------------------------------------------------------------ fused polyphase ConvTranspose1d

def conv_transpose1d_pallas(x, wt, b, *, stride, padding, output_padding=0,
                            pre_slope=None, compute_dtype=jnp.float32, t_tile=None):
    """ConvTranspose1d via polyphase decomposition, all phases fused into ONE conv.

    x: (B, Cin, L), wt: (Cin, Cout, K) (PyTorch ConvTranspose1d layout), b: (Cout,).
    The per-phase weights are stacked along Cout (each phase padded to Cout_p), so x is
    read from HBM once and a single pallas_call produces all phases; the interleave is
    one XLA transpose.  No zero-insertion -> no zeros hit the MXU.
    """
    B, Cin, L = x.shape
    Cin_w, Cout, K = wt.shape
    assert Cin_w == Cin
    s = int(stride)
    assert K >= s, "polyphase path assumes kernel_size >= stride (true for HiFi-GAN)"

    w_eq = jnp.flip(jnp.transpose(wt, (1, 0, 2)), axis=-1)        # (Cout, Cin, K)
    pad_l_full = K - 1 - padding
    Lout = (L - 1) * s - 2 * padding + K + output_padding
    Lq = -(-Lout // s)
    assert Lq > 0
    Cout_p = _round_up(Cout, 8)

    # Per-phase taps and input offsets.
    phase_w, phase_d0, phase_K = [], [], []
    for r in range(s):
        k0 = (pad_l_full - r) % s
        w_r = w_eq[:, :, k0::s]                                   # (Cout, Cin, Kr)
        phase_w.append(w_r)
        phase_K.append(w_r.shape[2])
        phase_d0.append((r + k0 - pad_l_full) // s)               # exact integer

    D = min(phase_d0)
    Kf = max(d0 - D + Kr for d0, Kr in zip(phase_d0, phase_K))

    # Fused weight: phase r occupies rows [r*Cout_p, (r+1)*Cout_p); its taps are shifted
    # by delta_r = d0_r - D so every phase reads the SAME input window x[q + D : q + D + Kf].
    Wf = jnp.zeros((s, Cout_p, Cin, Kf), w_eq.dtype)
    for r in range(s):
        delta = phase_d0[r] - D
        Wf = Wf.at[r, :Cout, :, delta:delta + phase_K[r]].set(phase_w[r])
    Wf = Wf.reshape(s * Cout_p, Cin, Kf)
    bf = jnp.zeros((s, Cout_p), jnp.float32).at[:, :Cout].set(
        b.astype(jnp.float32)[None, :]).reshape(s * Cout_p)

    # Align the input so padded_x[q + j'] == x[q + D + j'] for q in [0, Lq), j' in [0, Kf).
    left = -D
    xr, Lr = x, L
    if left < 0:                                                  # negative pad -> crop
        xr = xr[:, :, -left:]
        Lr += left
        left = 0
    right = (Lq + Kf - 1) - (Lr + left)
    if right < 0:
        xr = xr[:, :, :right]
        right = 0

    y = conv1d_pallas(xr, Wf, bf, dilation=1, padding=(left, right),
                      pre_slope=pre_slope, compute_dtype=compute_dtype, t_tile=t_tile)
    # y: (B, s*Cout_p, Lq) -> interleave phases: out[b, c, q*s + r] = y[b, r*Cout_p + c, q]
    y = y.reshape(B, s, Cout_p, Lq)
    y = jnp.transpose(y, (0, 2, 3, 1)).reshape(B, Cout_p, Lq * s)
    return y[:, :Cout, :Lout]


# ------------------------------------------------------------------ Generator (Pallas path)

def resblock_forward(rb, x, *, extra_residual=None, out_scale=1.0,
                     compute_dtype=jnp.float32, t_tile=None):
    """ResBlock1/2 with residual adds, xs-accumulation and /num_kernels scale fused into
    the last conv's epilogue (all in f32)."""
    ksz = rb['ksize']
    dil = rb['dilation']
    n = len(dil)
    cur = x
    for m, d in enumerate(dil):
        last = (m == n - 1)
        res = (cur, extra_residual) if (last and extra_residual is not None) else (cur,)
        sc = out_scale if last else 1.0
        if rb['kind'] == '1':
            xt = conv1d_pallas(cur, rb['c1'][m]['w'], rb['c1'][m]['b'], dilation=d,
                               padding=get_padding(ksz, d), pre_slope=LRELU_SLOPE,
                               compute_dtype=compute_dtype, t_tile=t_tile)
            cur = conv1d_pallas(xt, rb['c2'][m]['w'], rb['c2'][m]['b'], dilation=1,
                                padding=get_padding(ksz, 1), pre_slope=LRELU_SLOPE,
                                residuals=res, out_scale=sc,
                                compute_dtype=compute_dtype, t_tile=t_tile)
        else:
            cur = conv1d_pallas(cur, rb['convs'][m]['w'], rb['convs'][m]['b'], dilation=d,
                                padding=get_padding(ksz, d), pre_slope=LRELU_SLOPE,
                                residuals=res, out_scale=sc,
                                compute_dtype=compute_dtype, t_tile=t_tile)
    return cur


def generator_forward(params, x, h, *, compute_dtype=jnp.float32, t_tile=None):
    nk = len(h['resblock_kernel_sizes'])
    cd = compute_dtype
    x = conv1d_pallas(x, params['conv_pre']['w'], params['conv_pre']['b'],
                      padding=3, compute_dtype=cd, t_tile=t_tile)
    for i, (u, k) in enumerate(zip(h['upsample_rates'], h['upsample_kernel_sizes'])):
        if (k - u) % 2 == 0:
            p, op = (k - u) // 2, 0
        else:
            p, op = (k - u) // 2 + 1, 1
        x = conv_transpose1d_pallas(x, params['ups'][i]['w'], params['ups'][i]['b'],
                                    stride=u, padding=p, output_padding=op,
                                    pre_slope=LRELU_SLOPE, compute_dtype=cd, t_tile=t_tile)
        xs = None
        for j in range(nk):
            last = (j == nk - 1)
            xs = resblock_forward(params['resblocks'][i * nk + j], x,
                                  extra_residual=xs,
                                  out_scale=(1.0 / nk) if last else 1.0,
                                  compute_dtype=cd, t_tile=t_tile)
        x = xs
    # F.leaky_relu default slope 0.01, conv_post, tanh -- all fused into one kernel.
    x = conv1d_pallas(x, params['conv_post']['w'], params['conv_post']['b'],
                      padding=3, pre_slope=0.01, post_tanh=True,
                      compute_dtype=cd, t_tile=t_tile)
    return x


# ------------------------------------------------------------------ pure-JAX f32 reference

def _leaky(x, slope):
    return jnp.where(x >= 0, x, slope * x)


def conv1d_ref(x, w, b, *, dilation=1, padding=0):
    if isinstance(padding, int):
        padding = (padding, padding)
    y = lax.conv_general_dilated(x, w, (1,), [padding], rhs_dilation=(dilation,),
                                 dimension_numbers=('NCH', 'OIH', 'NCH'))
    return y + b[None, :, None]


def conv_transpose1d_ref(x, wt, b, *, stride, padding, output_padding=0):
    K = wt.shape[2]
    w_eq = jnp.flip(jnp.transpose(wt, (1, 0, 2)), axis=-1)
    y = lax.conv_general_dilated(x, w_eq, (1,),
                                 [(K - 1 - padding, K - 1 - padding + output_padding)],
                                 lhs_dilation=(stride,),
                                 dimension_numbers=('NCH', 'OIH', 'NCH'))
    return y + b[None, :, None]


def resblock_ref(rb, x):
    ksz = rb['ksize']
    if rb['kind'] == '1':
        for m, d in enumerate(rb['dilation']):
            xt = _leaky(x, LRELU_SLOPE)
            xt = conv1d_ref(xt, rb['c1'][m]['w'], rb['c1'][m]['b'], dilation=d,
                            padding=get_padding(ksz, d))
            xt = _leaky(xt, LRELU_SLOPE)
            xt = conv1d_ref(xt, rb['c2'][m]['w'], rb['c2'][m]['b'], dilation=1,
                            padding=get_padding(ksz, 1))
            x = xt + x
    else:
        for m, d in enumerate(rb['dilation']):
            xt = _leaky(x, LRELU_SLOPE)
            xt = conv1d_ref(xt, rb['convs'][m]['w'], rb['convs'][m]['b'], dilation=d,
                            padding=get_padding(ksz, d))
            x = xt + x
    return x


def generator_forward_ref(params, x, h):
    nk = len(h['resblock_kernel_sizes'])
    x = conv1d_ref(x, params['conv_pre']['w'], params['conv_pre']['b'], padding=3)
    for i, (u, k) in enumerate(zip(h['upsample_rates'], h['upsample_kernel_sizes'])):
        if (k - u) % 2 == 0:
            p, op = (k - u) // 2, 0
        else:
            p, op = (k - u) // 2 + 1, 1
        x = _leaky(x, LRELU_SLOPE)
        x = conv_transpose1d_ref(x, params['ups'][i]['w'], params['ups'][i]['b'],
                                 stride=u, padding=p, output_padding=op)
        xs = None
        for j in range(nk):
            y = resblock_ref(params['resblocks'][i * nk + j], x)
            xs = y if xs is None else xs + y
        x = xs / nk
    x = _leaky(x, 0.01)
    x = conv1d_ref(x, params['conv_post']['w'], params['conv_post']['b'], padding=3)
    return jnp.tanh(x)


# ------------------------------------------------------------------ params

def init_params(key, h):
    std = 0.1
    keys = iter(jax.random.split(key, 512))

    def nrm(shape):
        return std * jax.random.normal(next(keys), shape, jnp.float32)

    params = {'conv_pre': dict(w=nrm((h['upsample_initial_channel'], h['num_mels'], 7)),
                               b=nrm((h['upsample_initial_channel'],))),
              'ups': [], 'resblocks': []}
    for i, (u, k) in enumerate(zip(h['upsample_rates'], h['upsample_kernel_sizes'])):
        cin = h['upsample_initial_channel'] // (2 ** i)
        cout = h['upsample_initial_channel'] // (2 ** (i + 1))
        params['ups'].append(dict(w=nrm((cin, cout, k)), b=nrm((cout,))))
    for i in range(len(h['upsample_rates'])):
        ch = h['upsample_initial_channel'] // (2 ** (i + 1))
        for ksz, dil in zip(h['resblock_kernel_sizes'], h['resblock_dilation_sizes']):
            if h['resblock'] == '1':
                rb = dict(kind='1', ksize=ksz, dilation=tuple(dil),
                          c1=[dict(w=nrm((ch, ch, ksz)), b=nrm((ch,))) for _ in dil],
                          c2=[dict(w=nrm((ch, ch, ksz)), b=nrm((ch,))) for _ in dil])
            else:
                rb = dict(kind='2', ksize=ksz, dilation=tuple(dil),
                          convs=[dict(w=nrm((ch, ch, ksz)), b=nrm((ch,))) for _ in dil])
            params['resblocks'].append(rb)
    ch = h['upsample_initial_channel'] // (2 ** len(h['upsample_rates']))
    params['conv_post'] = dict(w=nrm((1, ch, 7)), b=nrm((1,)))
    return params


# ------------------------------------------------------------------ main

if __name__ == "__main__":
    h = dict(
        num_mels=8,
        upsample_initial_channel=32,
        upsample_rates=[2, 2],
        upsample_kernel_sizes=[4, 4],
        resblock='1',
        resblock_kernel_sizes=[3, 5],
        resblock_dilation_sizes=[[1, 3, 5], [1, 3, 5]],
    )
    key = jax.random.PRNGKey(0)
    kp, kx = jax.random.split(key)
    params = init_params(kp, h)

    B, T = 2, 16
    x = jax.random.normal(kx, (B, h['num_mels'], T), jnp.float32)

    ref = jax.block_until_ready(generator_forward_ref(params, x, h))

    # Standalone conv check that exercises the per-tap (Cin_p >= 128) kernel path,
    # which the tiny generator config does not hit.
    kc0, kc1, kc2 = jax.random.split(kx, 3)
    xc = jax.random.normal(kc0, (2, 128, 192), jnp.float32)
    wc = 0.1 * jax.random.normal(kc1, (16, 128, 5), jnp.float32)
    bc = 0.1 * jax.random.normal(kc2, (16,), jnp.float32)
    yc = jax.block_until_ready(
        conv1d_pallas(xc, wc, bc, dilation=2, padding=get_padding(5, 2),
                      pre_slope=LRELU_SLOPE))
    yr = conv1d_ref(_leaky(xc, LRELU_SLOPE), wc, bc, dilation=2,
                    padding=get_padding(5, 2))
    err_tap = float(jnp.max(jnp.abs(yc - yr)))
    assert err_tap < 1e-4, f"per-tap conv mismatch: {err_tap}"

    # float32 path: must match the reference tightly (validates conv / fused polyphase /
    # epilogue fusion math).
    out_f32 = jax.block_until_ready(
        generator_forward(params, x, h, compute_dtype=jnp.float32))
    assert out_f32.shape == (B, 1, T * 2 * 2), out_f32.shape
    err32 = float(jnp.max(jnp.abs(out_f32.astype(jnp.float32) - ref)))
    assert err32 < 1e-4, f"f32 mismatch: {err32}"

    # bfloat16 path (fast path on v6e/v7x; epilogue stays f32): loose check vs f32 ref.
    out_bf16 = jax.block_until_ready(
        generator_forward(params, x, h, compute_dtype=jnp.bfloat16))
    errbf = float(jnp.max(jnp.abs(out_bf16.astype(jnp.float32) - ref)))
    assert errbf < 5e-2, f"bf16 mismatch: {errbf}"

    print("KERNEL_OK")
</pallas_src>

<mosaic_0001>
module attributes {stable_mosaic.version = 11 : i64} {
  func.func @kernel(%arg0: i32, %arg1: i32, %arg2: memref<1x128x256xf32, #tpu.memory_space<vmem>>, %arg3: memref<1x128x128xf32, #tpu.memory_space<vmem>>, %arg4: memref<5x16x128xf32, #tpu.memory_space<vmem>>, %arg5: memref<16x1xf32, #tpu.memory_space<vmem>>, %arg6: memref<1x16x256xf32, #tpu.memory_space<vmem>>) attributes {dimension_semantics = [#tpu.dimension_semantics<parallel>, #tpu.dimension_semantics<parallel>], iteration_bounds = array<i64: 2, 1>, scalar_prefetch = 0 : i64, scratch_operands = 0 : i64, tpu.core_type = #tpu.core_type<tc>, window_params = [{transform_indices = @transform_0, window_bounds = array<i64: 1, 128, 256>}, {transform_indices = @transform_1, window_bounds = array<i64: 1, 128, 128>}, {pipeline_mode = #tpu.pipeline_mode<synchronous>, transform_indices = @transform_2, window_bounds = array<i64: 5, 16, 128>}, {pipeline_mode = #tpu.pipeline_mode<synchronous>, transform_indices = @transform_3, window_bounds = array<i64: 16, 1>}, {transform_indices = @transform_4, window_bounds = array<i64: 1, 16, 256>}]} {
    %c0 = arith.constant 0 : index
    %c0_0 = arith.constant 0 : index
    %c0_1 = arith.constant 0 : index
    %0 = vector.load %arg2[%c0, %c0_0, %c0_1] : memref<1x128x256xf32, #tpu.memory_space<vmem>>, vector<1x128x256xf32>
    %1 = vector.shape_cast %0 : vector<1x128x256xf32> to vector<128x256xf32>
    %c0_2 = arith.constant 0 : index
    %c0_3 = arith.constant 0 : index
    %c0_4 = arith.constant 0 : index
    %2 = vector.load %arg3[%c0_2, %c0_3, %c0_4] : memref<1x128x128xf32, #tpu.memory_space<vmem>>, vector<1x128x128xf32>
    %3 = vector.shape_cast %2 : vector<1x128x128xf32> to vector<128x128xf32>
    %4 = tpu.concatenate %1, %3 in 1 : vector<128x256xf32>, vector<128x128xf32> -> vector<128x384xf32>
    %cst = arith.constant 0.000000e+00 : f32
    %5 = vector.broadcast %cst : f32 to vector<128x384xf32>
    %6 = arith.cmpf oge, %4, %5 : vector<128x384xf32>
    %cst_5 = arith.constant 1.000000e-01 : f32
    %7 = vector.broadcast %cst_5 : f32 to vector<128x384xf32>
    %8 = arith.mulf %7, %4 : vector<128x384xf32>
    %9 = arith.select %6, %4, %8 : vector<128x384xi1>, vector<128x384xf32>
    %c0_6 = arith.constant 0 : index
    %c0_7 = arith.constant 0 : index
    %c0_8 = arith.constant 0 : index
    %10 = vector.load %arg4[%c0_6, %c0_7, %c0_8] : memref<5x16x128xf32, #tpu.memory_space<vmem>>, vector<1x16x128xf32>
    %11 = vector.shape_cast %10 : vector<1x16x128xf32> to vector<16x128xf32>
    %12 = vector.extract_strided_slice %9 {offsets = [0, 0], sizes = [128, 256], strides = [1, 1]} : vector<128x384xf32> to vector<128x256xf32>
    %cst_9 = arith.constant dense<0.000000e+00> : vector<16x256xf32>
    %13 = tpu.matmul %11, %12, %cst_9 {dimension_numbers = #tpu.dot_dimension_numbers<[1], [0], [0], [1], [0, 0, 1, 1], [], []>} : vector<16x128xf32>, vector<128x256xf32>, vector<16x256xf32> -> vector<16x256xf32>
    %c1 = arith.constant 1 : index
    %c0_10 = arith.constant 0 : index
    %c0_11 = arith.constant 0 : index
    %14 = vector.load %arg4[%c1, %c0_10, %c0_11] : memref<5x16x128xf32, #tpu.memory_space<vmem>>, vector<1x16x128xf32>
    %15 = vector.shape_cast %14 : vector<1x16x128xf32> to vector<16x128xf32>
    %16 = vector.extract_strided_slice %9 {offsets = [0, 2], sizes = [128, 256], strides = [1, 1]} : vector<128x384xf32> to vector<128x256xf32>
    %cst_12 = arith.constant dense<0.000000e+00> : vector<16x256xf32>
    %17 = tpu.matmul %15, %16, %cst_12 {dimension_numbers = #tpu.dot_dimension_numbers<[1], [0], [0], [1], [0, 0, 1, 1], [], []>} : vector<16x128xf32>, vector<128x256xf32>, vector<16x256xf32> -> vector<16x256xf32>
    %18 = arith.addf %13, %17 : vector<16x256xf32>
    %c2 = arith.constant 2 : index
    %c0_13 = arith.constant 0 : index
    %c0_14 = arith.constant 0 : index
    %19 = vector.load %arg4[%c2, %c0_13, %c0_14] : memref<5x16x128xf32, #tpu.memory_space<vmem>>, vector<1x16x128xf32>
    %20 = vector.shape_cast %19 : vector<1x16x128xf32> to vector<16x128xf32>
    %21 = vector.extract_strided_slice %9 {offsets = [0, 4], sizes = [128, 256], strides = [1, 1]} : vector<128x384xf32> to vector<128x256xf32>
    %cst_15 = arith.constant dense<0.000000e+00> : vector<16x256xf32>
    %22 = tpu.matmul %20, %21, %cst_15 {dimension_numbers = #tpu.dot_dimension_numbers<[1], [0], [0], [1], [0, 0, 1, 1], [], []>} : vector<16x128xf32>, vector<128x256xf32>, vector<16x256xf32> -> vector<16x256xf32>
    %23 = arith.addf %18, %22 : vector<16x256xf32>
    %c3 = arith.constant 3 : index
    %c0_16 = arith.constant 0 : index
    %c0_17 = arith.constant 0 : index
    %24 = vector.load %arg4[%c3, %c0_16, %c0_17] : memref<5x16x128xf32, #tpu.memory_space<vmem>>, vector<1x16x128xf32>
    %25 = vector.shape_cast %24 : vector<1x16x128xf32> to vector<16x128xf32>
    %26 = vector.extract_strided_slice %9 {offsets = [0, 6], sizes = [128, 256], strides = [1, 1]} : vector<128x384xf32> to vector<128x256xf32>
    %cst_18 = arith.constant dense<0.000000e+00> : vector<16x256xf32>
    %27 = tpu.matmul %25, %26, %cst_18 {dimension_numbers = #tpu.dot_dimension_numbers<[1], [0], [0], [1], [0, 0, 1, 1], [], []>} : vector<16x128xf32>, vector<128x256xf32>, vector<16x256xf32> -> vector<16x256xf32>
    %28 = arith.addf %23, %27 : vector<16x256xf32>
    %c4 = arith.constant 4 : index
    %c0_19 = arith.constant 0 : index
    %c0_20 = arith.constant 0 : index
    %29 = vector.load %arg4[%c4, %c0_19, %c0_20] : memref<5x16x128xf32, #tpu.memory_space<vmem>>, vector<1x16x128xf32>
    %30 = vector.shape_cast %29 : vector<1x16x128xf32> to vector<16x128xf32>
    %31 = vector.extract_strided_slice %9 {offsets = [0, 8], sizes = [128, 256], strides = [1, 1]} : vector<128x384xf32> to vector<128x256xf32>
    %cst_21 = arith.constant dense<0.000000e+00> : vector<16x256xf32>
    %32 = tpu.matmul %30, %31, %cst_21 {dimension_numbers = #tpu.dot_dimension_numbers<[1], [0], [0], [1], [0, 0, 1, 1], [], []>} : vector<16x128xf32>, vector<128x256xf32>, vector<16x256xf32> -> vector<16x256xf32>
    %33 = arith.addf %28, %32 : vector<16x256xf32>
    %c0_22 = arith.constant 0 : index
    %c0_23 = arith.constant 0 : index
    %34 = vector.load %arg5[%c0_22, %c0_23] : memref<16x1xf32, #tpu.memory_space<vmem>>, vector<16x1xf32>
    %35 = vector.broadcast %34 : vector<16x1xf32> to vector<16x256xf32>
    %36 = arith.addf %33, %35 : vector<16x256xf32>
    %c0_24 = arith.constant 0 : index
    %c0_25 = arith.constant 0 : index
    %c0_26 = arith.constant 0 : index
    %37 = vector.load %arg6[%c0_24, %c0_25, %c0_26] : memref<1x16x256xf32, #tpu.memory_space<vmem>>, vector<1x16x256xf32>
    %38 = vector.shape_cast %37 : vector<1x16x256xf32> to vector<16x256xf32>
    %39 = vector.shape_cast %36 : vector<16x256xf32> to vector<1x16x256xf32>
    tpu.vector_store %arg6[%c0_24, %c0_25, %c0_26], %39 {strides = array<i32>} : memref<1x16x256xf32, #tpu.memory_space<vmem>>, vector<1x16x256xf32>,
    return
  }
  func.func @transform_0(%arg0: i32, %arg1: i32) -> (i32, i32, i32) {
    %c0_i32 = arith.constant 0 : i32
    %c0_i32_0 = arith.constant 0 : i32
    return %arg0, %c0_i32, %arg1 : i32, i32, i32
  }
  func.func @transform_1(%arg0: i32, %arg1: i32) -> (i32, i32, i32) {
    %c1_i32 = arith.constant 1 : i32
    %0 = arith.addi %arg1, %c1_i32 : i32
    %c2_i32 = arith.constant 2 : i32
    %1 = arith.muli %0, %c2_i32 : i32
    %c0_i32 = arith.constant 0 : i32
    %c0_i32_0 = arith.constant 0 : i32
    return %arg0, %c0_i32, %1 : i32, i32, i32
  }
  func.func @transform_2(%arg0: i32, %arg1: i32) -> (i32, i32, i32) {
    %c0_i32 = arith.constant 0 : i32
    %c0_i32_0 = arith.constant 0 : i32
    %c0_i32_1 = arith.constant 0 : i32
    %c0_i32_2 = arith.constant 0 : i32
    return %c0_i32, %c0_i32_0, %c0_i32_1 : i32, i32, i32
  }
  func.func @transform_3(%arg0: i32, %arg1: i32) -> (i32, i32) {
    %c0_i32 = arith.constant 0 : i32
    %c0_i32_0 = arith.constant 0 : i32
    %c0_i32_1 = arith.constant 0 : i32
    return %c0_i32, %c0_i32_0 : i32, i32
  }
  func.func @transform_4(%arg0: i32, %arg1: i32) -> (i32, i32, i32) {
    %c0_i32 = arith.constant 0 : i32
    %c0_i32_0 = arith.constant 0 : i32
    return %arg0, %c0_i32, %arg1 : i32, i32, i32
  }
}

</mosaic_0001>

<bundles_post_ra>
// kernel: tpu_custom_call.1
= control target key start
LH: loop header
LB: loop body
LE: loop exit
PB: predicated region body
PF: predicated region fallthrough
CT: control target
= control target key end

     0   :  { %s3624_s0 = inlined_call_operand.hbm [shape: f32[2,128,384], index: 0, kind: input, shape index: {}]   ;;  %s3625_s1 = inlined_call_operand.hbm [shape: f32[2,128,384], index: 1, kind: input, shape index: {}]   ;;  %s3626_s2 = inlined_call_operand.hbm [shape: f32[5,16,128], index: 2, kind: input, shape index: {}]   ;;  %s3627_s3 = inlined_call_operand.vmem [shape: f32[16,1], index: 3, kind: input, shape index: {}]   ;;  %s3628_s4 = inlined_call_operand.hbm [shape: f32[2,16,256], index: 4, kind: output, shape index: {}]  }
   0x1   :  { %3655 = sst [smem:[#allocation31_spill]] %s3624_s0 }
   0x2   :  { %3656 = sst [smem:[#allocation32_spill]] %s3626_s2 }
   0x3   :  { %9 = vsyncpa [#allocation3], 0 }
   0x4   :  { %11 = vsyncpa [#allocation3 + $0x1], 0 }
   0x5   :  { %12 = vsyncpa [#allocation6], 0 }
   0x6   :  { %14 = vsyncpa [#allocation6 + $0x1], 0 }
   0x7   :  { %15 = vsyncpa [#allocation4], 0 }
   0x8   :  { %17 = vsyncpa [#allocation4 + $0x1], 0  ;;  %s2775_s15 = smov 0   ;;  %s2777_s16 = smov 0  }
   0x9   :  { %s2779_s17 = smov 0   ;;  %s2781_s18 = smov 0  }
   0xa   :  { %s2783_s19 = smov 0   ;;  %s2785_s20 = smov 0  }
   0xb LB: > { %3657 = sst [smem:[#allocation13_spill]] %s2719_s17  ;;  %s2806_s21 = sadd.s32 4294967295, %s2731_s20   ;;  %s2731_s20 = sphi %s2785_s20, %s23_s20   ;;  %s2727_s19 = sphi %s2783_s19, %s3718_s19   ;;  %s2723_s18 = sphi %s2781_s18, %s3717_s18   ;;  %s2719_s17 = sphi %s2779_s17, %s3713_s17   ;;  %s2715_s16 = sphi %s2777_s16, %s3716_s16   ;;  %s2711_s15 = sphi %s2775_s15, %s3715_s15  }
   0xc   : > { %s1767_s22 = sadd.s32 4294967294, %s2731_s20   ;;  %s44_s23 = sadd.s32 1, %s2719_s17 }
   0xd   : > { %p51_p0 = scmp.ne.s32.totalorder %s2719_s17, %s2715_s16  ;;  %p52_p1 = scmp.eq.s32.totalorder %s2731_s20, 0 }
   0xe   : > { %p57_p2 = scmp.ne.s32.totalorder %s2715_s16, %s2711_s15  ;;  %p3629_p3 = scmp.eq.s32.totalorder %s2806_s21, 0 }
   0xf   : > { %p157_p4 = scmp.eq.s32.totalorder %s2806_s21, 1  ;;  %p2817_p5 = por %p52_p1, %p51_p0 }
  0x10   : > { %p163_p6 = scmp.eq.s32.totalorder %s1767_s22, 1  ;;  %p2823_p7 = por %p3629_p3, %p57_p2 }
  0x11   : > { %p2827_p8 = por %p157_p4, %p51_p0  ;;  %p1768_p10 = scmp.ge.s32.totalorder %s2731_s20, 1 }
  0x12   : > { %s3659_s25 = scalar_select %p2823_p7, 1, 0 }
  0x13   : > { %s3660_s26 = scalar_select %p2827_p8, 1, 0 }
  0x14   : > { %p2831_p9 = por %p163_p6, %p57_p2  ;;  %p170_p11 = scmp.lt.s32.totalorder %s2731_s20, 3 }
  0x15   : > { %s2733_s29 = smov [#allocation7]   ;;  %p2005_p1 = scmp.lt.s32.totalorder %s2731_s20, 2 }
  0x16   : > { %s3661_s27 = scalar_select %p2831_p9, 1, 0 }
  0x17   : > { %p2837_p12 = pnand %p1768_p10, %p170_p11  ;;  %s182_s30 = sshll.u32 %s2733_s29, 4  ;;  %s2841_s30 = int_to_ptr.vmem [resolvable:$true] %s182_s30 }
  0x18   : > { %3662 = sst [smem:[#allocation14_spill]] %s3661_s27  ;;  %p2855_p4 = pnand %p2005_p1, %p2817_p5 }
  0x19   : > { %s3663_s28 = scalar_select %p2837_p12, 1, 0 }
  0x1a   : > { %p1989_p13 = pneg %p2837_p12  ;;  %s35_s7 = sadd.s32 1, %s2727_s19 }
  0x1b   : > { %s3665_s6 = scalar_select %p2855_p4, 1, 0 }
  0x1c   : > { %p2849_p2 = pnand %p1989_p13, %p3629_p3  ;;  %p2860_p6 = scmp.ge.s32.totalorder %s35_s7, 2 }
  0x1d   : > { %s3667_s2 = sld [smem:[#allocation32_spill]] }
  0x1e   : > { %s3666_s8 = scalar_select %p2860_p6, 1, 0 }
  0x1f   : > { %p2554_p11 = pneg %p2849_p2 }
  0x23   : > { %s2552_s11 = scalar_lea.hbm %s3667_s2, 1280 }
  0x24   : > { %p2553_p10 = scmp.ne.s32.totalorder %s3667_s2, %s2552_s11  ;;  %p2559_p1 = scmp.lt.u32.totalorder %s2552_s11, %s3667_s2 }
  0x26   : > { %p2555_p13 = pnand %p2554_p11, %p2553_p10 }
  0x28   : > { %p2556_p5 = pneg %p2555_p13 }
  0x2a   : > { %p2561_p0 = pnand %p2559_p1, %p2556_p5 }
  0x2c   : > { %2564 = shalt.err (!%p2561_p0)
}
  0x2d   : > { %s2565_s24 = scalar_lea.vmem %s2841_s30, 1280  ;;  %p2573_p7 = scmp.lt.s32.totalorder %s2841_s30, %s2841_s30 }
  0x2e   : > { %p2566_p3 = scmp.ne.s32.totalorder %s2841_s30, %s2565_s24  ;;  %p2574_p12 = scmp.lt.s32.totalorder %s2565_s24, %s2565_s24 }
  0x30   : > { %p2568_p9 = pnand %p2566_p3, %p2554_p11  ;;  %p2575_p4 = por %p2574_p12, %p2573_p7 }
  0x32   : > { %p2569_p8 = pneg %p2568_p9 }
  0x34   : > { %p2576_p6 = pnand %p2575_p4, %p2569_p8 }
  0x36   : > { %2579 = shalt.err (!%p2576_p6)
}
  0x37   : > { %s3635_s29 = smov 128   ;;  %s3636_s9 = smov 8  }
  0x38   : > { %1992 = dma.hbm_to_vmem [thread:$0]  (!%p2849_p2), %s3667_s2, 1280, %s2841_s30, [#allocation6], %s3635_s29, %s3635_s29, %s3636_s9  }
  0x39   : > { %s2889_s12 = sand.u32 1, %s2719_s17   ;;  %p3668_p3 = scmp.ne.s32.totalorder %s3666_s8, 0 }
  0x3a   : > { %s1771_s13 = sshll.u32 %s2889_s12, 8  ;;  %s1978_s5 = smul.u32 6144, %s2727_s19 }
  0x3b   : > { %s3720_s7 = smov (%p3668_p3, %s35_s7), 0  ;;  %s203_s22 = scalar_lea.vmem [#allocation2], %s1771_s13 }
  0x3c   : > { %3669 = sst [smem:[#allocation15_spill]] %s3720_s7  ;;  %s39_s14 = ssub.s32 %s2727_s19, %s3720_s7 }
  0x3d   : > { %p42_p7 = scmp.eq.s32.totalorder %s39_s14, 0  ;;  %s219_s24 = sshll.u32 %s203_s22, 4  ;;  %s2911_s24 = int_to_ptr.vmem [resolvable:$true] %s219_s24 }
  0x3e   : > { %s3671_s0 = sld [smem:[#allocation31_spill]]  ;;  %s200_s8 = scalar_lea.sflag [#allocation3], %s2889_s12 }
  0x3f   : > { %s2902_s27 = scalar_select %p42_p7, %s2719_s17, %s44_s23  }
  0x40   : > { %p3672_p9 = scmp.ne.s32.totalorder %s3665_s6, 0 }
  0x41   : > { %3670 = sst [smem:[#allocation16_spill]] %s2902_s27 }
  0x42   : > { %p2582_p12 = pneg %p3672_p9 }
  0x44   : > { %s2909_s11 = scalar_lea.hbm %s3671_s0, %s1978_s5  ;;  %s2585_s22 = scalar_lea.hbm %s3671_s0, 12288 }
  0x45   : > { %s2580_s14 = scalar_lea.hbm %s2909_s11, 4096  ;;  %p2586_p4 = scmp.lt.u32.totalorder %s2909_s11, %s3671_s0 }
  0x46   : > { %p2581_p8 = scmp.ne.s32.totalorder %s2909_s11, %s2580_s14  ;;  %p2587_p6 = scmp.lt.u32.totalorder %s2585_s22, %s2580_s14 }
  0x47   : > { %p2589_p11 = scmp.lt.u32.totalorder %s2580_s14, %s2909_s11 }
  0x48   : > { %p2583_p0 = pnand %p2582_p12, %p2581_p8  ;;  %p2588_p10 = por %p2587_p6, %p2586_p4 }
  0x4a   : > { %p2584_p2 = pneg %p2583_p0  ;;  %p2590_p13 = por %p2589_p11, %p2588_p10 }
  0x4c   : > { %p2591_p5 = pnand %p2590_p13, %p2584_p2 }
  0x4e   : > { %2594 = shalt.err (!%p2591_p5)
}
  0x4f   : > { %s2595_s29 = scalar_lea.vmem %s2911_s24, 4096  ;;  %s2736_s23 = smov [#allocation2]  }
  0x50   : > { %p2596_p1 = scmp.ne.s32.totalorder %s2911_s24, %s2595_s29  ;;  %s2600_s13 = sshll.u32 %s2736_s23, 4  ;;  %s2601_s13 = int_to_ptr.vmem [resolvable:$false] %s2600_s13 }
  0x51   : > { %s2602_s30 = scalar_lea.vmem %s2601_s13, 8192  ;;  %p2603_p8 = scmp.lt.s32.totalorder %s2911_s24, %s2601_s13 }
  0x52   : > { %p2598_p3 = pnand %p2596_p1, %p2582_p12  ;;  %p2604_p0 = scmp.lt.s32.totalorder %s2602_s30, %s2595_s29 }
  0x54   : > { %p2599_p7 = pneg %p2598_p3  ;;  %p2605_p4 = por %p2604_p0, %p2603_p8 }
  0x56   : > { %p2606_p6 = pnand %p2605_p4, %p2599_p7 }
  0x58   : > { %2609 = shalt.err (!%p2606_p6)
}
  0x59   : > { %s2737_s14 = smov 384   ;;  %s2738_s22 = smov 256  }
  0x5a   : > { %s2739_s10 = smov 16   ;;  %s229_s23 = sand.u32 1, %s2731_s20  }
  0x5b   : > { %1996 = dma.hbm_to_vmem [thread:$0]  (!%p3672_p9), %s2909_s11, 4096, %s2911_s24, %s200_s8, %s2737_s14, %s2738_s22, %s2739_s10  }
  0x5c   : > { %s1773_s29 = sshll.u32 %s2889_s12, 7  ;;  %s1688_s9 = scalar_lea.hbm %s3625_s1, %s1978_s5 }
  0x5d   : > { %s233_s0 = scalar_lea.vmem [#allocation5], %s1773_s29  ;;  %s2949_s7 = scalar_lea.hbm %s1688_s9, 256 }
  0x5e   : > { %s243_s2 = sshll.u32 %s233_s0, 4  ;;  %s2953_s27 = scalar_lea.sflag [#allocation6], %s229_s23  ;;  %s2951_s2 = int_to_ptr.vmem [resolvable:$true] %s243_s2 }
  0x5f   : > { %s2640_s17 = scalar_lea.hbm %s1688_s9, 2304  ;;  %s2615_s5 = scalar_lea.hbm %s3625_s1, 12288 }
  0x60   : > { %p2611_p2 = scmp.ne.s32.totalorder %s2949_s7, %s2640_s17  ;;  %p2616_p13 = scmp.lt.u32.totalorder %s2949_s7, %s3625_s1 }
  0x61   : > { %p2617_p5 = scmp.lt.u32.totalorder %s2615_s5, %s2640_s17  ;;  %p2619_p3 = scmp.lt.u32.totalorder %s2640_s17, %s2949_s7 }
  0x62   : > { %p2613_p10 = pnand %p2611_p2, %p2582_p12 }
  0x63   : > { %p2618_p1 = por %p2617_p5, %p2616_p13 }
  0x64   : > { %p2614_p11 = pneg %p2613_p10 }
  0x65   : > { %p2620_p7 = por %p2619_p3, %p2618_p1 }
  0x67   : > { %p2621_p8 = pnand %p2620_p7, %p2614_p11 }
  0x69   : > { %2624 = shalt.err (!%p2621_p8)
}
  0x6a   : > { %s2625_s9 = scalar_lea.vmem %s2951_s2, 2048  ;;  %s2740_s8 = smov [#allocation5]  }
  0x6b   : > { %p2626_p0 = scmp.ne.s32.totalorder %s2951_s2, %s2625_s9  ;;  %s2630_s22 = sshll.u32 %s2740_s8, 4  ;;  %s2631_s22 = int_to_ptr.vmem [resolvable:$false] %s2630_s22 }
  0x6c   : > { %s2632_s10 = scalar_lea.vmem %s2631_s22, 4096  ;;  %p2633_p2 = scmp.lt.s32.totalorder %s2951_s2, %s2631_s22 }
  0x6d   : > { %p2628_p4 = pnand %p2626_p0, %p2582_p12  ;;  %p2634_p10 = scmp.lt.s32.totalorder %s2632_s10, %s2625_s9 }
  0x6f   : > { %p2629_p6 = pneg %p2628_p4  ;;  %p2635_p13 = por %p2634_p10, %p2633_p2 }
  0x71   : > { %p2636_p5 = pnand %p2635_p13, %p2629_p6 }
  0x73   : > { %2639 = shalt.err (!%p2636_p5)
}
  0x74   : > { %s3673_s17 = smov 8   ;;  %s3674_s23 = smov 128  }
  0x75   : > { %1999 = dma.hbm_to_vmem [thread:$0]  (!%p3672_p9), %s2949_s7, 2048, %s2951_s2, %s2953_s27, %s2737_s14, %s3674_s23, %s3673_s17  }
  0x76   : > { %p3675_p12 = scmp.ne.s32.totalorder %s3663_s28, 0 }
  0x78   : > { %255 = sbr.rel (%p3675_p12) target bundleno = 689 (0x2b1), region = 36 }
  0x7f   : > { %s2984_s29 = sand.u32 1, %s2715_s16   ;;  %p3676_p11 = scmp.ne.s32.totalorder %s3659_s25, 0 }
  0x80   : > { %s1776_s13 = sshll.u32 %s2984_s29, 8  ;;  %s258_s30 = scalar_lea.sflag [#allocation3], %s2984_s29 }
  0x81   : > { %s2988_s12 = scalar_lea.vmem [#allocation2], %s1776_s13 }
  0x82   : > { %2694 = dma.done.wait (%p3676_p11), %s258_s30, 4096  }
  0x83   : > { %2696 = vsyncadd (%p3676_p11), %s258_s30, 4294963200  ;;  %s266_s2 = sand.u32 1, %s2806_s21   ;;  %s1777_s27 = sshll.u32 %s2984_s29, 7 }
  0x84   : > { %s267_s28 = scalar_lea.sflag [#allocation6], %s266_s2  ;;  %s2996_s6 = scalar_lea.vmem [#allocation5], %s1777_s27 }
  0x85   : > { %2698 = dma.done.wait (%p3676_p11), %s267_s28, 2048  }
  0x86   : > { %2700 = vsyncadd (%p3676_p11), %s267_s28, 4294965248  ;;  %p3677_p9 = scmp.eq.s32.totalorder %s2806_s21, 0 }
  0x88   : > { %2702 = dma.done.wait (%p3677_p9), [#allocation6], 1280   ;;  %p3678_p1 = pmov %p3677_p9 }
  0x89   : > { %v315_v0 = vld [vmem:[%s2988_s12 + $0x18] sm:$0xff]  ;;  %v345_v1 = vld [vmem:[%s2996_s6 + $0x8] sm:$0xff]  ;;  %v312_v2 = vld [vmem:[%s2988_s12] sm:$0xff]  ;;  %s2741_s21 = smov 126   ;;  %s2742_s25 = smov 124  }
  0x8a   : > { %2704 = vsyncadd (%p3678_p1), [#allocation6], 4294966016  ;;  %vm364_vm0 = vcmp.ge.f32.partialorder %v315_v0, 0.0  ;;  %vm365_vm1 = vcmp.ge.f32.partialorder %v345_v1, 0.0  ;;  %v412_v3 = vmul.f32 0.1, %v315_v0 }
  0x8b   : > { %v413_v4 = vmul.f32 0.1, %v345_v1  ;;  %v313_v5 = vld [vmem:[%s2988_s12 + $0x8] sm:$0xff]  ;;  %vm360_vm2 = vcmp.ge.f32.partialorder %v312_v2, 0.0  ;;  %v408_v6 = vmul.f32 0.1, %v312_v2 }
  0x8c   : > { %v316_v7 = vld [vmem:[%s2988_s12 + $0x20] sm:$0xff]  ;;  %v317_v8 = vld [vmem:[%s2988_s12 + $0x28] sm:$0xff]  ;;  %v3012_v9 = vsel %vm364_vm0, %v315_v0, %v412_v3  ;;  %vm361_vm3 = vcmp.ge.f32.partialorder %v313_v5, 0.0  ;;  %v409_v11 = vmul.f32 0.1, %v313_v5  ;;  %v314_v12 = vld [vmem:[%s2988_s12 + $0x10] sm:$0xff] }
  0x8d   : > { %v461_v10 = vsel %vm365_vm1, %v345_v1, %v413_v4  ;;  %v344_v13 = vld [vmem:[%s2996_s6] sm:$0xff]  ;;  %v3019_v15 = vsel %vm360_vm2, %v312_v2, %v408_v6  ;;  %vm366_vm4 = vcmp.ge.f32.partialorder %v316_v7, 0.0  ;;  %vm367_vm5 = vcmp.ge.f32.partialorder %v317_v8, 0.0  ;;  %v319_v16 = vld [vmem:[%s2988_s12 + $0x38] sm:$0xff]  ;;  %v346_v17 = vld [vmem:[%s2996_s6 + $0x10] sm:$0xff]  ;;  %s2744_s7 = smov 122  }
  0x8e   : > { %v3017_v14 = vpack.i.bf16 %v461_v10, %v3012_v9  ;;  %v3023_v18 = vsel %vm361_vm3, %v313_v5, %v409_v11  ;;  %v414_v19 = vmul.f32 0.1, %v316_v7  ;;  %v415_v20 = vmul.f32 0.1, %v317_v8  ;;  %v318_v34 = vld [vmem:[%s2988_s12 + $0x30] sm:$0xff]  ;;  %v347_v35 = vld [vmem:[%s2996_s6 + $0x18] sm:$0xff] }
  0x8f   : > { %vm362_vm6 = vcmp.ge.f32.partialorder %v344_v13, 0.0  ;;  %v2070_v21 = vpack.i.bf16 %v3023_v18, %v3019_v15  ;;  %vm363_vm7 = vcmp.ge.f32.partialorder %v314_v12, 0.0  ;;  %v410_v22 = vmul.f32 0.1, %v344_v13  ;;  %v323_v41 = vld [vmem:[%s2988_s12 + $0x58] sm:$0xff]  ;;  %v349_v42 = vld [vmem:[%s2996_s6 + $0x28] sm:$0xff] }
  0x90   : > { %2081 = vrot.lane.b32.xlu1 %v3017_v14, %s2741_s21  ;;  %v411_v23 = vmul.f32 0.1, %v314_v12  ;;  %v3029_v24 = vsel %vm366_vm4, %v316_v7, %v414_v19  ;;  %v3031_v25 = vsel %vm367_vm5, %v317_v8, %v415_v20  ;;  %vm368_vm8 = vcmp.ge.f32.partialorder %v346_v17, 0.0  ;;  %v321_v46 = vld [vmem:[%s2988_s12 + $0x48] sm:$0xff]  ;;  %v348_v47 = vld [vmem:[%s2996_s6 + $0x20] sm:$0xff]  ;;  %v322_v58 = vld [vmem:[%s2988_s12 + $0x50] sm:$0xff] }
  0x91   : > { %vm370_vm9 = vcmp.ge.f32.partialorder %v319_v16, 0.0  ;;  %2071 = vrot.lane.b32.xlu0 %v2070_v21, %s2741_s21  ;;  %v2085_v26 = vpack.i.bf16 %v3031_v25, %v3029_v24  ;;  %v458_v27 = vsel %vm362_vm6, %v344_v13, %v410_v22  ;;  %v416_v29 = vmul.f32 0.1, %v346_v17  ;;  %v320_v57 = vld [vmem:[%s2988_s12 + $0x40] sm:$0xff]  ;;  %v327_v1 = vld [vmem:[%s2988_s12 + $0x78] sm:$0xff]  ;;  %v325_v3 = vld [vmem:[%s2988_s12 + $0x68] sm:$0xff] }
  0x92   : > { %v3036_v28 = vsel %vm363_vm7, %v314_v12, %v411_v23  ;;  %v418_v31 = vmul.f32 0.1, %v319_v16  ;;  %v3041_v32 = vpack.i.bf16 %v458_v27, %v3023_v18  ;;  %v417_v38 = vmul.f32 0.1, %v318_v34  ;;  %v351_v2 = vld [vmem:[%s2996_s6 + $0x38] sm:$0xff]  ;;  %v350_v4 = vld [vmem:[%s2996_s6 + $0x30] sm:$0xff] }
  0x93   : > { %v2075_v30 = vpack.i.bf16 %v3036_v28, %v458_v27  ;;  %v464_v33 = vsel %vm368_vm8, %v346_v17, %v416_v29  ;;  %v419_v39 = vmul.f32 0.1, %v347_v35  ;;  %v3053_v40 = vpack.i.bf16 %v3036_v28, %v3019_v15  ;;  %v324_v17 = vld [vmem:[%s2988_s12 + $0x60] sm:$0xff]  ;;  %v326_v19 = vld [vmem:[%s2988_s12 + $0x70] sm:$0xff]  ;;  %v331_v29 = vld [vmem:[%s2988_s12 + $0x98] sm:$0xff]  ;;  %s2745_s14 = smov 120  }
  0x94   : > { %2086 = vrot.lane.b32.xlu1 %v2085_v26, %s2741_s21  ;;  %v3045_v36 = vsel %vm370_vm9, %v319_v16, %v418_v31  ;;  %vm369_vm10 = vcmp.ge.f32.partialorder %v318_v34, 0.0  ;;  %vm371_vm11 = vcmp.ge.f32.partialorder %v347_v35, 0.0  ;;  %v3063_v45 = vpack.i.bf16 %v464_v33, %v3031_v25  ;;  %v329_v31 = vld [vmem:[%s2988_s12 + $0x88] sm:$0xff]  ;;  %s1779_s9 = sshll.u32 %s2984_s29, 5  ;;  %s1785_s10 = sshll.u32 %s2723_s18, 9 }
  0x95   : > { %2076 = vrot.lane.b32.xlu0 %v2075_v30, %s2741_s21  ;;  %v2090_v37 = vpack.i.bf16 %v3045_v36, %v464_v33  ;;  %v3058_v43 = vsel %vm369_vm10, %v318_v34, %v417_v38  ;;  %v467_v44 = vsel %vm371_vm11, %v347_v35, %v419_v39  ;;  %v424_v48 = vmul.f32 0.1, %v323_v41  ;;  %v353_v30 = vld [vmem:[%s2996_s6 + $0x48] sm:$0xff]  ;;  %v352_v33 = vld [vmem:[%s2996_s6 + $0x40] sm:$0xff]  ;;  %s303_s8 = scalar_lea.vmem [#allocation8], %s1779_s9  ;;  %s3575_s13 = scalar_lea.hbm %s3628_s4, %s1785_s10 }
  0x96   : > { %v425_v49 = vmul.f32 0.1, %v349_v42  ;;  %v2110_v50 = vpack.i.bf16 %v3058_v43, %v467_v44  ;;  %vm376_vm12 = vcmp.ge.f32.partialorder %v323_v41, 0.0  ;;  %vm377_vm13 = vcmp.ge.f32.partialorder %v349_v42, 0.0  ;;  %s1643_s22 = sshll.u32 %s303_s8, 4  ;;  %s1628_s18 = scalar_lea.sflag [#allocation4], %s2984_s29  ;;  %s3570_s22 = int_to_ptr.vmem [resolvable:$true] %s1643_s22 }
  0x97   : > { %v421_v51 = vmul.f32 0.1, %v321_v46  ;;  %v422_v52 = vmul.f32 0.1, %v348_v47  ;;  %v3074_v53 = vpack.i.bf16 %v3058_v43, %v3029_v24  ;;  %vm373_vm14 = vcmp.ge.f32.partialorder %v321_v46, 0.0  ;;  %s2641_s30 = scalar_lea.vmem %s3570_s22, 512 }
  0x98   : > { %2096 = vrot.lane.b32.xlu1 %v3041_v32, %s2742_s25  ;;  %vm374_vm15 = vcmp.ge.f32.partialorder %v348_v47, 0.0  ;;  %v3076_v54 = vsel %vm376_vm12, %v323_v41, %v424_v48  ;;  %v473_v55 = vsel %vm377_vm13, %v349_v42, %v425_v49  ;;  %v3080_v56 = vpack.i.bf16 %v467_v44, %v3045_v36  ;;  %v330_v48 = vld [vmem:[%s2988_s12 + $0x90] sm:$0xff]  ;;  %p2642_p3 = scmp.ne.s32.totalorder %s3570_s22, %s2641_s30  ;;  %p3708_p7 = scmp.ne.s32.totalorder %s3660_s26, 0 }
  0x99   : > { %2091 = vrot.lane.b32.xlu0 %v2090_v37, %s2741_s21  ;;  %v3084_v59 = vsel %vm373_vm14, %v321_v46, %v421_v51  ;;  %v470_v60 = vsel %vm374_vm15, %v348_v47, %v422_v52  ;;  %v3089_v61 = vpack.i.bf16 %v473_v55, %v3076_v54  ;;  %v420_v62 = vmul.f32 0.1, %v320_v57  ;;  %v328_v47 = vld [vmem:[%s2988_s12 + $0x80] sm:$0xff] }
  0x9a   : > { %v423_v63 = vmul.f32 0.1, %v322_v58  ;;  %v3094_v0 = vpack.i.bf16 %v470_v60, %v3084_v59  ;;  %vm372_vm0 = vcmp.ge.f32.partialorder %v320_v57, 0.0  ;;  %vm375_vm1 = vcmp.ge.f32.partialorder %v322_v58, 0.0  ;;  %v355_v60 = vld [vmem:[%s2996_s6 + $0x58] sm:$0xff]  ;;  %p2643_p8 = pnand %p2642_p3, %p3708_p7 }
  0x9b   : > { %v3102_v5 = vsel %vm372_vm0, %v320_v57, %v420_v62  ;;  %v430_v7 = vmul.f32 0.1, %v327_v1  ;;  %v431_v8 = vmul.f32 0.1, %v351_v2  ;;  %vm382_vm2 = vcmp.ge.f32.partialorder %v327_v1, 0.0  ;;  %v333_v62 = vld [vmem:[%s2988_s12 + $0xa8] sm:$0xff] }
  0x9c   : > { %2106 = vrot.lane.b32.xlu1 %v3053_v40, %s2742_s25  ;;  %v3104_v6 = vsel %vm375_vm1, %v322_v58, %v423_v63  ;;  %vm383_vm3 = vcmp.ge.f32.partialorder %v351_v2, 0.0  ;;  %v427_v10 = vmul.f32 0.1, %v325_v3  ;;  %v428_v11 = vmul.f32 0.1, %v350_v4  ;;  %v335_v58 = vld [vmem:[%s2988_s12 + $0xb8] sm:$0xff]  ;;  %p2644_p0 = pneg %p2643_p8 }
  0x9d   : > { %2101 = vrot.lane.b32.xlu0 %v3017_v14, %s2742_s25  ;;  %v3112_v12 = vpack.i.bf16 %v3104_v6, %v3102_v5  ;;  %vm379_vm4 = vcmp.ge.f32.partialorder %v325_v3, 0.0  ;;  %vm380_vm5 = vcmp.ge.f32.partialorder %v350_v4, 0.0  ;;  %v3114_v13 = vsel %vm382_vm2, %v327_v1, %v430_v7  ;;  %v354_v63 = vld [vmem:[%s2996_s6 + $0x50] sm:$0xff] }
  0x9e   : > { %v479_v16 = vsel %vm383_vm3, %v351_v2, %v431_v8  ;;  %v3120_v20 = vsel %vm379_vm4, %v325_v3, %v427_v10  ;;  %v476_v21 = vsel %vm380_vm5, %v350_v4, %v428_v11  ;;  %v426_v23 = vmul.f32 0.1, %v324_v17 }
  0x9f   : > { %v3125_v22 = vpack.i.bf16 %v479_v16, %v3114_v13  ;;  %v429_v26 = vmul.f32 0.1, %v326_v19  ;;  %v3130_v27 = vpack.i.bf16 %v476_v21, %v3120_v20  ;;  %vm378_vm6 = vcmp.ge.f32.partialorder %v324_v17, 0.0 }
  0xa0   : > { %2116 = vrot.lane.b32.xlu1 %v3063_v45, %s2742_s25  ;;  %vm381_vm7 = vcmp.ge.f32.partialorder %v326_v19, 0.0  ;;  %v3138_v34 = vsel %vm378_vm6, %v324_v17, %v426_v23  ;;  %v436_v37 = vmul.f32 0.1, %v331_v29  ;;  %v437_v38 = vmul.f32 0.1, %v353_v30  ;;  %v332_v17 = vld [vmem:[%s2988_s12 + $0xa0] sm:$0xff] }
  0xa1   : > { %2111 = vrot.lane.b32.xlu0 %v2110_v50, %s2741_s21  ;;  %v3140_v35 = vsel %vm381_vm7, %v326_v19, %v429_v26  ;;  %vm388_vm8 = vcmp.ge.f32.partialorder %v331_v29, 0.0  ;;  %vm389_vm9 = vcmp.ge.f32.partialorder %v353_v30, 0.0  ;;  %v433_v39 = vmul.f32 0.1, %v329_v31  ;;  %v334_v19 = vld [vmem:[%s2988_s12 + $0xb0] sm:$0xff] }
  0xa2   : > { %v434_v41 = vmul.f32 0.1, %v352_v33  ;;  %v3148_v42 = vpack.i.bf16 %v3140_v35, %v3138_v34  ;;  %vm385_vm10 = vcmp.ge.f32.partialorder %v329_v31, 0.0  ;;  %vm386_vm11 = vcmp.ge.f32.partialorder %v352_v33, 0.0 }
  0xa3   : > { %v3150_v44 = vsel %vm388_vm8, %v331_v29, %v436_v37  ;;  %v485_v46 = vsel %vm389_vm9, %v353_v30, %v437_v38  ;;  %v3156_v49 = vsel %vm385_vm10, %v329_v31, %v433_v39  ;;  %v432_v52 = vmul.f32 0.1, %v328_v47  ;;  %v357_v37 = vld [vmem:[%s2996_s6 + $0x68] sm:$0xff]  ;;  %v356_v39 = vld [vmem:[%s2996_s6 + $0x60] sm:$0xff] }
  0xa4   : > { %2126 = vrot.lane.b32.xlu1 %v3074_v53, %s2742_s25  ;;  %v482_v50 = vsel %vm386_vm11, %v352_v33, %v434_v41  ;;  %v3161_v51 = vpack.i.bf16 %v485_v46, %v3150_v44  ;;  %v435_v55 = vmul.f32 0.1, %v330_v48  ;;  %vm384_vm12 = vcmp.ge.f32.partialorder %v328_v47, 0.0  ;;  %v339_v33 = vld [vmem:[%s2988_s12 + $0xd8] sm:$0xff]  ;;  %v337_v38 = vld [vmem:[%s2988_s12 + $0xc8] sm:$0xff] }
  0xa5   : > { %2121 = vrot.lane.b32.xlu0 %v3080_v56, %s2742_s25  ;;  %v3166_v57 = vpack.i.bf16 %v482_v50, %v3156_v49  ;;  %vm387_vm13 = vcmp.ge.f32.partialorder %v330_v48, 0.0  ;;  %v3174_v1 = vsel %vm384_vm12, %v328_v47, %v432_v52  ;;  %v442_v3 = vmul.f32 0.1, %v335_v58 }
  0xa6   : > { %3679 = vst [vmem:[#allocation17_spill] sm:$0xff] %v3174_v1  ;;  %v3176_v2 = vsel %vm387_vm13, %v330_v48, %v435_v55  ;;  %v443_v4 = vmul.f32 0.1, %v355_v60  ;;  %vm394_vm14 = vcmp.ge.f32.partialorder %v335_v58, 0.0  ;;  %vm395_vm15 = vcmp.ge.f32.partialorder %v355_v60, 0.0 }
  0xa7   : > { %3680 = vst [vmem:[#allocation18_spill] sm:$0xff] %v3176_v2  ;;  %v439_v7 = vmul.f32 0.1, %v333_v62  ;;  %v440_v8 = vmul.f32 0.1, %v354_v63  ;;  %v3184_v10 = vpack.i.bf16 %v3176_v2, %v3174_v1  ;;  %vm391_vm0 = vcmp.ge.f32.partialorder %v333_v62, 0.0 }
  0xa8   : > { %2136 = vrot.lane.b32.xlu1 %v3089_v61, %s2741_s21  ;;  %vm392_vm1 = vcmp.ge.f32.partialorder %v354_v63, 0.0  ;;  %v3186_v11 = vsel %vm394_vm14, %v335_v58, %v442_v3  ;;  %v491_v16 = vsel %vm395_vm15, %v355_v60, %v443_v4  ;;  %v438_v29 = vmul.f32 0.1, %v332_v17 }
  0xa9   : > { %2131 = vrot.lane.b32.xlu0 %v3094_v0, %s2741_s21  ;;  %3681 = vst [vmem:[#allocation19_spill] sm:$0xff] %v3186_v11  ;;  %v3192_v21 = vsel %vm391_vm0, %v333_v62, %v439_v7  ;;  %v488_v23 = vsel %vm392_vm1, %v354_v63, %v440_v8  ;;  %v3197_v26 = vpack.i.bf16 %v491_v16, %v3186_v11  ;;  %v441_v30 = vmul.f32 0.1, %v334_v19  ;;  %v336_v62 = vld [vmem:[%s2988_s12 + $0xc0] sm:$0xff]  ;;  %v338_v63 = vld [vmem:[%s2988_s12 + $0xd0] sm:$0xff] }
  0xaa   : > { %3682 = vst [vmem:[#allocation20_spill] sm:$0xff] %v3192_v21  ;;  %v3202_v31 = vpack.i.bf16 %v488_v23, %v3192_v21  ;;  %vm390_vm2 = vcmp.ge.f32.partialorder %v332_v17, 0.0  ;;  %vm393_vm3 = vcmp.ge.f32.partialorder %v334_v19, 0.0  ;;  %v448_v47 = vmul.f32 0.1, %v339_v33  ;;  %v359_v23 = vld [vmem:[%s2996_s6 + $0x78] sm:$0xff] }
  0xab   : > { %v3210_v41 = vsel %vm390_vm2, %v332_v17, %v438_v29  ;;  %v3212_v46 = vsel %vm393_vm3, %v334_v19, %v441_v30  ;;  %v449_v48 = vmul.f32 0.1, %v357_v37  ;;  %vm400_vm4 = vcmp.ge.f32.partialorder %v339_v33, 0.0  ;;  %v343_v19 = vld [vmem:[%s2988_s12 + $0xf8] sm:$0xff]  ;;  %v341_v29 = vld [vmem:[%s2988_s12 + $0xe8] sm:$0xff]  ;;  %v358_v30 = vld [vmem:[%s2996_s6 + $0x70] sm:$0xff] }
  0xac   : > { %2146 = vrot.lane.b32.xlu1 %v3089_v61, %s2742_s25  ;;  %3683 = vst [vmem:[#allocation21_spill] sm:$0xff] %v3210_v41  ;;  %3684 = vst [vmem:[#allocation22_spill] sm:$0xff] %v3212_v46  ;;  %vm401_vm5 = vcmp.ge.f32.partialorder %v357_v37, 0.0  ;;  %v445_v50 = vmul.f32 0.1, %v337_v38  ;;  %v3220_v55 = vpack.i.bf16 %v3212_v46, %v3210_v41  ;;  %vm397_vm6 = vcmp.ge.f32.partialorder %v337_v38, 0.0 }
  0xad   : > { %2141 = vrot.lane.b32.xlu0 %v3094_v0, %s2742_s25  ;;  %v446_v52 = vmul.f32 0.1, %v356_v39  ;;  %vm398_vm7 = vcmp.ge.f32.partialorder %v356_v39, 0.0  ;;  %v3222_v58 = vsel %vm400_vm4, %v339_v33, %v448_v47  ;;  %v497_v60 = vsel %vm401_vm5, %v357_v37, %v449_v48 }
  0xae   : > { %3685 = vst [vmem:[#allocation23_spill] sm:$0xff] %v3222_v58  ;;  %v3228_v3 = vsel %vm397_vm6, %v337_v38, %v445_v50  ;;  %v3233_v7 = vpack.i.bf16 %v497_v60, %v3222_v58  ;;  %v444_v8 = vmul.f32 0.1, %v336_v62  ;;  %v447_v16 = vmul.f32 0.1, %v338_v63 }
  0xaf   : > { %3686 = vst [vmem:[#allocation24_spill] sm:$0xff] %v3228_v3  ;;  %v494_v4 = vsel %vm398_vm7, %v356_v39, %v446_v52  ;;  %vm396_vm8 = vcmp.ge.f32.partialorder %v336_v62, 0.0  ;;  %vm399_vm9 = vcmp.ge.f32.partialorder %v338_v63, 0.0  ;;  %v454_v38 = vmul.f32 0.1, %v343_v19 }
  0xb0   : > { %2156 = vrot.lane.b32.xlu1 %v3112_v12, %s2742_s25  ;;  %v3238_v17 = vpack.i.bf16 %v494_v4, %v3228_v3  ;;  %v3246_v33 = vsel %vm396_vm8, %v336_v62, %v444_v8  ;;  %v3248_v37 = vsel %vm399_vm9, %v338_v63, %v447_v16  ;;  %v455_v39 = vmul.f32 0.1, %v359_v23  ;;  %v340_v62 = vld [vmem:[%s2988_s12 + $0xe0] sm:$0xff]  ;;  %v342_v63 = vld [vmem:[%s2988_s12 + $0xf0] sm:$0xff]  ;;  %s2747_s12 = smov [#allocation8]  }
  0xb1   : > { %2151 = vrot.lane.b32.xlu0 %v3112_v12, %s2741_s21  ;;  %3687 = vst [vmem:[#allocation25_spill] sm:$0xff] %v3246_v33  ;;  %3688 = vst [vmem:[#allocation26_spill] sm:$0xff] %v3248_v37  ;;  %vm406_vm10 = vcmp.ge.f32.partialorder %v343_v19, 0.0  ;;  %vm407_vm11 = vcmp.ge.f32.partialorder %v359_v23, 0.0  ;;  %v451_v47 = vmul.f32 0.1, %v341_v29  ;;  %v3256_v50 = vpack.i.bf16 %v3248_v37, %v3246_v33 }
  0xb2   : > { %v452_v48 = vmul.f32 0.1, %v358_v30  ;;  %vm403_vm12 = vcmp.ge.f32.partialorder %v341_v29, 0.0  ;;  %vm404_vm13 = vcmp.ge.f32.partialorder %v358_v30, 0.0  ;;  %v3258_v52 = vsel %vm406_vm10, %v343_v19, %v454_v38  ;;  %s2645_s2 = sshll.u32 %s2747_s12, 4  ;;  %s2646_s2 = int_to_ptr.vmem [resolvable:$false] %s2645_s2 }
  0xb3   : > { %3689 = vst [vmem:[#allocation27_spill] sm:$0xff] %v3258_v52  ;;  %v503_v60 = vsel %vm407_vm11, %v359_v23, %v455_v39  ;;  %v3264_v4 = vsel %vm403_vm12, %v341_v29, %v451_v47  ;;  %v450_v37 = vmul.f32 0.1, %v340_v62  ;;  %v453_v33 = vmul.f32 0.1, %v342_v63  ;;  %s2647_s27 = scalar_lea.vmem %s2646_s2, 1024  ;;  %p2648_p4 = scmp.lt.s32.totalorder %s3570_s22, %s2646_s2 }
  0xb4   : > { %2166 = vrot.lane.b32.xlu1 %v3125_v22, %s2741_s21  ;;  %3690 = vst [vmem:[#allocation28_spill] sm:$0xff] %v3264_v4  ;;  %v500_v8 = vsel %vm404_vm13, %v358_v30, %v452_v48  ;;  %v3269_v16 = vpack.i.bf16 %v503_v60, %v3258_v52  ;;  %vm402_vm14 = vcmp.ge.f32.partialorder %v340_v62, 0.0  ;;  %vm405_vm15 = vcmp.ge.f32.partialorder %v342_v63, 0.0  ;;  %p2649_p6 = scmp.lt.s32.totalorder %s2647_s27, %s2641_s30 }
  0xb5   : > { %2161 = vrot.lane.b32.xlu0 %v3130_v27, %s2741_s21  ;;  %v3274_v19 = vpack.i.bf16 %v500_v8, %v3264_v4  ;;  %v3278_v23 = vsel %vm402_vm14, %v340_v62, %v450_v37  ;;  %v3280_v29 = vsel %vm405_vm15, %v342_v63, %v453_v33  ;;  %v3641_v38 = vmov 0.0  }
  0xb6   : > { %3691 = vst [vmem:[#allocation29_spill] sm:$0xff] %v3278_v23  ;;  %3692 = vst [vmem:[#allocation30_spill] sm:$0xff] %v3280_v29  ;;  %v3288_v30 = vpack.i.bf16 %v3280_v29, %v3278_v23  ;;  %782 = vmatprep.mubr.f32.mxu1 %v3641_v38  ;;  %1100 = vmatprep.mubr.f32.mxu0 %v3641_v38  ;;  %vm653_vm0 = vcmask 1031168   ;;  %vm971_vm1 = vcmask 1014784   ;;  %vm1216_vm2 = vcmask 998400   ;;  %p2650_p2 = por %p2649_p6, %p2648_p4 }
  0xb7   : > { %vm1461_vm3 = vcmask 982016  }
  0xb8   : > { %2176 = vrot.lane.b32.xlu1 %v3125_v22, %s2742_s25  ;;  %p2651_p10 = pnand %p2650_p2, %p2644_p0 }
  0xb9   : > { %2171 = vrot.lane.b32.xlu0 %v3130_v27, %s2742_s25 }
  0xbc   : > { %2186 = vrot.lane.b32.xlu1 %v3148_v42, %s2742_s25 }
  0xbd   : > { %2181 = vrot.lane.b32.xlu0 %v3148_v42, %s2741_s21 }
  0xc0   : > { %2196 = vrot.lane.b32.xlu1 %v3161_v51, %s2741_s21 }
  0xc1   : > { %2191 = vrot.lane.b32.xlu0 %v3166_v57, %s2741_s21 }
  0xc4   : > { %2206 = vrot.lane.b32.xlu1 %v3161_v51, %s2742_s25 }
  0xc5   : > { %2201 = vrot.lane.b32.xlu0 %v3166_v57, %s2742_s25 }
  0xc8   : > { %2216 = vrot.lane.b32.xlu1 %v3184_v10, %s2742_s25 }
  0xc9   : > { %2211 = vrot.lane.b32.xlu0 %v3184_v10, %s2741_s21 }
  0xcc   : > { %2226 = vrot.lane.b32.xlu1 %v3197_v26, %s2741_s21 }
  0xcd   : > { %2221 = vrot.lane.b32.xlu0 %v3202_v31, %s2741_s21 }
  0xd0   : > { %2236 = vrot.lane.b32.xlu1 %v3197_v26, %s2742_s25 }
  0xd1   : > { %2231 = vrot.lane.b32.xlu0 %v3202_v31, %s2742_s25 }
  0xd4   : > { %2246 = vrot.lane.b32.xlu1 %v3220_v55, %s2742_s25 }
  0xd5   : > { %2241 = vrot.lane.b32.xlu0 %v3220_v55, %s2741_s21 }
  0xd8   : > { %2256 = vrot.lane.b32.xlu1 %v3233_v7, %s2741_s21 }
  0xd9   : > { %2251 = vrot.lane.b32.xlu0 %v3238_v17, %s2741_s21 }
  0xdc   : > { %2266 = vrot.lane.b32.xlu1 %v3233_v7, %s2742_s25 }
  0xdd   : > { %2261 = vrot.lane.b32.xlu0 %v3238_v17, %s2742_s25 }
  0xe0   : > { %2276 = vrot.lane.b32.xlu1 %v3256_v50, %s2742_s25 }
  0xe1   : > { %2271 = vrot.lane.b32.xlu0 %v3256_v50, %s2741_s21 }
  0xe4   : > { %2286 = vrot.lane.b32.xlu1 %v3269_v16, %s2741_s21 }
  0xe5   : > { %2281 = vrot.lane.b32.xlu0 %v3274_v19, %s2741_s21 }
  0xe8   : > { %2296 = vrot.lane.b32.xlu1 %v3269_v16, %s2742_s25 }
  0xe9   : > { %2291 = vrot.lane.b32.xlu0 %v3274_v19, %s2742_s25 }
  0xec   : > { %2306 = vrot.lane.b32.xlu1 %v3288_v30, %s2742_s25 }
  0xed   : > { %2301 = vrot.lane.b32.xlu0 %v3288_v30, %s2741_s21 }
  0xf0   : > { %2316 = vrot.lane.b32.xlu1 %v3017_v14, %s2744_s7 }
  0xf1   : > { %2311 = vrot.lane.b32.xlu0 %v3041_v32, %s2744_s7 }
  0xf4   : > { %2326 = vrot.lane.b32.xlu1 %v3063_v45, %s2744_s7 }
  0xf5   : > { %2321 = vrot.lane.b32.xlu0 %v3053_v40, %s2744_s7 }
  0xf8   : > { %2336 = vrot.lane.b32.xlu1 %v3074_v53, %s2744_s7 }
  0xf9   : > { %2331 = vrot.lane.b32.xlu0 %v3080_v56, %s2744_s7 }
  0xfc   : > { %2346 = vrot.lane.b32.xlu1 %v3089_v61, %s2744_s7 }
  0xfd   : > { %2341 = vrot.lane.b32.xlu0 %v3094_v0, %s2744_s7 }
 0x100   : > { %2356 = vrot.lane.b32.xlu1 %v3130_v27, %s2744_s7 }
 0x101   : > { %2351 = vrot.lane.b32.xlu0 %v3112_v12, %s2744_s7 }
 0x102   : > { %v2082_v33 = vpop.permute.xlu1 %2081 }
 0x103   : > { %v2072_v37 = vpop.permute.xlu0 %2071  ;;  %v2084_v47 = vunpack.i.h.bf16 %v2082_v33  ;;  %v2083_v48 = vunpack.i.l.bf16 %v2082_v33 }
 0x104   : > { %2366 = vrot.lane.b32.xlu1 %v3148_v42, %s2744_s7  ;;  %v2074_v60 = vunpack.i.h.bf16 %v2072_v37  ;;  %v2073_v62 = vunpack.i.l.bf16 %v2072_v37 }
 0x105   : > { %2361 = vrot.lane.b32.xlu0 %v3125_v22, %s2744_s7  ;;  %v657_v52 = vsel %vm653_vm0, %v2083_v48, %v2084_v47 }
 0x106   : > { %v2087_v39 = vpop.permute.xlu1 %2086  ;;  %v654_v4 = vsel %vm653_vm0, %v2073_v62, %v2074_v60 }
 0x107   : > { %v2077_v63 = vpop.permute.xlu0 %2076 }
 0x108   : > { %2376 = vrot.lane.b32.xlu1 %v3161_v51, %s2744_s7  ;;  %v2079_v8 = vunpack.i.h.bf16 %v2077_v63  ;;  %v2078_v38 = vunpack.i.l.bf16 %v2077_v63 }
 0x109   : > { %2371 = vrot.lane.b32.xlu0 %v3166_v57, %s2744_s7 }
 0x10a   : > { %v2097_v29 = vpop.permute.xlu1 %2096  ;;  %v655_v23 = vsel %vm653_vm0, %v2074_v60, %v2078_v38  ;;  %v656_v33 = vsel %vm653_vm0, %v2079_v8, %v2083_v48 }
 0x10b   : > { %v2092_v37 = vpop.permute.xlu0 %2091  ;;  %v1786_v58 = vpack.c.bf16 %v657_v52, %v655_v23  ;;  %v1788_v3 = vpack.c.bf16 %v656_v33, %v654_v4  ;;  %v2099_v46 = vunpack.i.h.bf16 %v2097_v29  ;;  %v2098_v41 = vunpack.i.l.bf16 %v2097_v29 }
 0x10c   : > { %2386 = vrot.lane.b32.xlu1 %v3202_v31, %s2744_s7  ;;  %v2089_v4 = vunpack.i.h.bf16 %v2087_v39  ;;  %v2088_v23 = vunpack.i.l.bf16 %v2087_v39  ;;  %v2093_v62 = vunpack.i.l.bf16 %v2092_v37 }
 0x10d   : > { %2381 = vrot.lane.b32.xlu0 %v3184_v10, %s2744_s7  ;;  %1787 = vmatprep.subr.bf16.mxu1 %v1786_v58 }
 0x10e   : > { %v2107_v63 = vpop.permute.xlu1 %2106  ;;  %1789 = vmatpush1.bf16.msra.mxu1 %v1788_v3  ;;  %v973_v3 = vsel %vm971_vm1, %v2098_v41, %v2099_v46  ;;  %v659_v46 = vsel %vm653_vm0, %v2089_v4, %v2093_v62 }
 0x10f   : > { %v2109_v38 = vunpack.i.h.bf16 %v2107_v63  ;;  %v2108_v47 = vunpack.i.l.bf16 %v2107_v63  ;;  %v2102_v11 = vpop.permute.xlu0 %2101 }
 0x110   : > { %2396 = vrot.lane.b32.xlu1 %v3220_v55, %s2744_s7  ;;  %v2104_v48 = vunpack.i.h.bf16 %v2102_v11  ;;  %v2103_v60 = vunpack.i.l.bf16 %v2102_v11 }
 0x111   : > { %v972_v52 = vsel %vm971_vm1, %v2108_v47, %v2098_v41  ;;  %2391 = vrot.lane.b32.xlu0 %v3197_v26, %s2744_s7  ;;  %v2094_v47 = vunpack.i.h.bf16 %v2092_v37 }
 0x112   : > { %v2117_v58 = vpop.permute.xlu1 %2116  ;;  %v975_v29 = vsel %vm971_vm1, %v2103_v60, %v2104_v48  ;;  %v974_v8 = vsel %vm971_vm1, %v2109_v38, %v2103_v60  ;;  %v658_v38 = vsel %vm653_vm0, %v2088_v23, %v2089_v4 }
 0x113   : > { %v2112_v33 = vpop.permute.xlu0 %2111  ;;  %v1850_v11 = vpack.c.bf16 %v975_v29, %v973_v3  ;;  %v1852_v63 = vpack.c.bf16 %v974_v8, %v972_v52  ;;  %v2119_v2 = vunpack.i.h.bf16 %v2117_v58  ;;  %v2118_v1 = vunpack.i.l.bf16 %v2117_v58 }
 0x114   : > { %2406 = vrot.lane.b32.xlu1 %v3233_v7, %s2744_s7  ;;  %v2114_v21 = vunpack.i.h.bf16 %v2112_v33  ;;  %v2113_v39 = vunpack.i.l.bf16 %v2112_v33 }
 0x115   : > { %2401 = vrot.lane.b32.xlu0 %v3238_v17, %s2744_s7  ;;  %1851 = vmatprep.subr.bf16.mxu0 %v1850_v11  ;;  %v977_v23 = vsel %vm971_vm1, %v2118_v1, %v2119_v2 }
 0x116   : > { %v2127_v41 = vpop.permute.xlu1 %2126  ;;  %1853 = vmatpush1.bf16.msra.mxu0 %v1852_v63  ;;  %v661_v3 = vsel %vm653_vm0, %v2094_v47, %v2113_v39  ;;  %v660_v37 = vsel %vm653_vm0, %v2114_v21, %v2094_v47 }
 0x117   : > { %v2129_v48 = vunpack.i.h.bf16 %v2127_v41  ;;  %v2128_v60 = vunpack.i.l.bf16 %v2127_v41  ;;  %v2122_v52 = vpop.permute.xlu0 %2121  ;;  %v1790_v58 = vpack.c.bf16 %v661_v3, %v659_v46  ;;  %v1792_v29 = vpack.c.bf16 %v660_v37, %v658_v38 }
 0x118   : > { %2416 = vrot.lane.b32.xlu1 %v3274_v19, %s2744_s7  ;;  %v2124_v8 = vunpack.i.h.bf16 %v2122_v52  ;;  %v2123_v33 = vunpack.i.l.bf16 %v2122_v52 }
 0x119   : > { %v976_v11 = vsel %vm971_vm1, %v2128_v60, %v2118_v1  ;;  %2411 = vrot.lane.b32.xlu0 %v3256_v50, %s2744_s7  ;;  %1791 = vmatprep.subr.bf16.mxu1 %v1790_v58 }
 0x11a   : > { %v2137_v4 = vpop.permute.xlu1 %2136  ;;  %1793 = vmatpush1.bf16.msra.mxu1 %v1792_v29  ;;  %v979_v63 = vsel %vm971_vm1, %v2123_v33, %v2124_v8  ;;  %v978_v47 = vsel %vm971_vm1, %v2129_v48, %v2123_v33 }
 0x11b   : > { %v2139_v62 = vunpack.i.h.bf16 %v2137_v4  ;;  %v2138_v21 = vunpack.i.l.bf16 %v2137_v4  ;;  %v2132_v39 = vpop.permute.xlu0 %2131  ;;  %v1854_v41 = vpack.c.bf16 %v979_v63, %v977_v23  ;;  %v1856_v46 = vpack.c.bf16 %v978_v47, %v976_v11 }
 0x11c   : > { %2426 = vrot.lane.b32.xlu1 %v3288_v30, %s2744_s7  ;;  %v2134_v38 = vunpack.i.h.bf16 %v2132_v39  ;;  %v2133_v60 = vunpack.i.l.bf16 %v2132_v39 }
 0x11d   : > { %v665_v3 = vsel %vm653_vm0, %v2138_v21, %v2139_v62  ;;  %2421 = vrot.lane.b32.xlu0 %v3269_v16, %s2744_s7  ;;  %1855 = vmatprep.subr.bf16.mxu0 %v1854_v41 }
 0x11e   : > { %v2147_v1 = vpop.permute.xlu1 %2146  ;;  %1857 = vmatpush1.bf16.msra.mxu0 %v1856_v46  ;;  %v663_v48 = vsel %vm653_vm0, %v2133_v60, %v2134_v38 }
 0x11f   : > { %v2149_v2 = vunpack.i.h.bf16 %v2147_v1  ;;  %v2148_v37 = vunpack.i.l.bf16 %v2147_v1  ;;  %v2142_v52 = vpop.permute.xlu0 %2141  ;;  %v1794_v58 = vpack.c.bf16 %v665_v3, %v663_v48 }
 0x120   : > { %2436 = vrot.lane.b32.xlu1 %v3017_v14, %s2745_s14  ;;  %v2144_v29 = vunpack.i.h.bf16 %v2142_v52  ;;  %v2143_v8 = vunpack.i.l.bf16 %v2142_v52 }
 0x121   : > { %v983_v33 = vsel %vm971_vm1, %v2148_v37, %v2149_v2  ;;  %2431 = vrot.lane.b32.xlu0 %v3041_v32, %s2745_s14  ;;  %1795 = vmatprep.subr.bf16.mxu1 %v1794_v58 }
 0x122   : > { %v2157_v11 = vpop.permute.xlu1 %2156  ;;  %v981_v62 = vsel %vm971_vm1, %v2143_v8, %v2144_v29 }
 0x123   : > { %v2159_v4 = vunpack.i.h.bf16 %v2157_v11  ;;  %v2158_v23 = vunpack.i.l.bf16 %v2157_v11  ;;  %v2152_v63 = vpop.permute.xlu0 %2151  ;;  %v1858_v47 = vpack.c.bf16 %v983_v33, %v981_v62 }
 0x124   : > { %2446 = vrot.lane.b32.xlu1 %v3063_v45, %s2745_s14  ;;  %v2154_v14 = vunpack.i.h.bf16 %v2152_v63  ;;  %v2153_v39 = vunpack.i.l.bf16 %v2152_v63 }
 0x125   : > { %v980_v41 = vsel %vm971_vm1, %v2158_v23, %v2143_v8  ;;  %v982_v46 = vsel %vm971_vm1, %v2159_v4, %v2148_v37  ;;  %2441 = vrot.lane.b32.xlu0 %v3053_v40, %s2745_s14  ;;  %1859 = vmatprep.subr.bf16.mxu0 %v1858_v47 }
 0x126   : > { %v2167_v32 = vpop.permute.xlu1 %2166  ;;  %v1860_v38 = vpack.c.bf16 %v982_v46, %v980_v41  ;;  %v662_v2 = vsel %vm653_vm0, %v2153_v39, %v2133_v60  ;;  %v664_v48 = vsel %vm653_vm0, %v2154_v14, %v2138_v21 }
 0x127   : > { %v2169_v3 = vunpack.i.h.bf16 %v2167_v32  ;;  %v2168_v1 = vunpack.i.l.bf16 %v2167_v32  ;;  %v2162_v45 = vpop.permute.xlu0 %2161  ;;  %v1796_v52 = vpack.c.bf16 %v664_v48, %v662_v2 }
 0x128   : > { %2456 = vrot.lane.b32.xlu1 %v3074_v53, %s2745_s14  ;;  %1861 = vmatpush1.bf16.msra.mxu0 %v1860_v38  ;;  %v2164_v58 = vunpack.i.h.bf16 %v2162_v45  ;;  %v2163_v37 = vunpack.i.l.bf16 %v2162_v45 }
 0x129   : > { %v669_v29 = vsel %vm653_vm0, %v2168_v1, %v2169_v3  ;;  %2451 = vrot.lane.b32.xlu0 %v3080_v56, %s2745_s14  ;;  %1797 = vmatpush1.bf16.msra.mxu1 %v1796_v52 }
 0x12a   : > { %v2177_v40 = vpop.permute.xlu1 %2176  ;;  %v667_v60 = vsel %vm653_vm0, %v2163_v37, %v2164_v58 }
 0x12b   : > { %v2179_v8 = vunpack.i.h.bf16 %v2177_v40  ;;  %v2178_v33 = vunpack.i.l.bf16 %v2177_v40  ;;  %v2172_v21 = vpop.permute.xlu0 %2171  ;;  %v1798_v53 = vpack.c.bf16 %v669_v29, %v667_v60 }
 0x12c   : > { %2466 = vrot.lane.b32.xlu1 %v3089_v61, %s2745_s14  ;;  %v2174_v11 = vunpack.i.h.bf16 %v2172_v21  ;;  %v2173_v4 = vunpack.i.l.bf16 %v2172_v21 }
 0x12d   : > { %v987_v23 = vsel %vm971_vm1, %v2178_v33, %v2179_v8  ;;  %2461 = vrot.lane.b32.xlu0 %v3094_v0, %s2745_s14  ;;  %1799 = vmatprep.subr.bf16.mxu1 %v1798_v53 }
 0x12e   : > { %v2187_v56 = vpop.permute.xlu1 %2186  ;;  %v985_v47 = vsel %vm971_vm1, %v2173_v4, %v2174_v11 }
 0x12f   : > { %v2189_v62 = vunpack.i.h.bf16 %v2187_v56  ;;  %v2188_v63 = vunpack.i.l.bf16 %v2187_v56  ;;  %v2182_v14 = vpop.permute.xlu0 %2181  ;;  %v1862_v39 = vpack.c.bf16 %v987_v23, %v985_v47 }
 0x130   : > { %2476 = vrot.lane.b32.xlu1 %v3130_v27, %s2745_s14  ;;  %v2184_v61 = vunpack.i.h.bf16 %v2182_v14  ;;  %v2183_v41 = vunpack.i.l.bf16 %v2182_v14 }
 0x131   : > { %v984_v46 = vsel %vm971_vm1, %v2188_v63, %v2173_v4  ;;  %v986_v32 = vsel %vm971_vm1, %v2189_v62, %v2178_v33  ;;  %2471 = vrot.lane.b32.xlu0 %v3112_v12, %s2745_s14  ;;  %1863 = vmatprep.subr.bf16.mxu0 %v1862_v39 }
 0x132   : > { %v2197_v0 = vpop.permute.xlu1 %2196  ;;  %v1864_v38 = vpack.c.bf16 %v986_v32, %v984_v46  ;;  %v666_v48 = vsel %vm653_vm0, %v2183_v41, %v2163_v37  ;;  %v668_v45 = vsel %vm653_vm0, %v2184_v61, %v2168_v1 }
 0x133   : > { %v2199_v3 = vunpack.i.h.bf16 %v2197_v0  ;;  %v2198_v2 = vunpack.i.l.bf16 %v2197_v0  ;;  %v2192_v27 = vpop.permute.xlu0 %2191  ;;  %v1800_v52 = vpack.c.bf16 %v668_v45, %v666_v48 }
 0x134   : > { %2486 = vrot.lane.b32.xlu1 %v3148_v42, %s2745_s14  ;;  %1865 = vmatpush1.bf16.msra.mxu0 %v1864_v38  ;;  %v2194_v58 = vunpack.i.h.bf16 %v2192_v27  ;;  %v2193_v29 = vunpack.i.l.bf16 %v2192_v27 }
 0x135   : > { %v673_v40 = vsel %vm653_vm0, %v2198_v2, %v2199_v3  ;;  %2481 = vrot.lane.b32.xlu0 %v3125_v22, %s2745_s14  ;;  %1801 = vmatpush1.bf16.msra.mxu1 %v1800_v52 }
 0x136   : > { %v2207_v12 = vpop.permute.xlu1 %2206  ;;  %v671_v37 = vsel %vm653_vm0, %v2193_v29, %v2194_v58 }
 0x137   : > { %v2209_v8 = vunpack.i.h.bf16 %v2207_v12  ;;  %v2208_v33 = vunpack.i.l.bf16 %v2207_v12  ;;  %v2202_v1 = vpop.permute.xlu0 %2201  ;;  %v1802_v42 = vpack.c.bf16 %v673_v40, %v671_v37 }
 0x138   : > { %2496 = vrot.lane.b32.xlu1 %v3161_v51, %s2745_s14  ;;  %v2204_v60 = vunpack.i.h.bf16 %v2202_v1  ;;  %v2203_v21 = vunpack.i.l.bf16 %v2202_v1 }
 0x139   : > { %v991_v53 = vsel %vm971_vm1, %v2208_v33, %v2209_v8  ;;  %2491 = vrot.lane.b32.xlu0 %v3166_v57, %s2745_s14  ;;  %1803 = vmatprep.subr.bf16.mxu1 %v1802_v42 }
 0x13a   : > { %v2217_v22 = vpop.permute.xlu1 %2216  ;;  %v989_v23 = vsel %vm971_vm1, %v2203_v21, %v2204_v60 }
 0x13b   : > { %v2219_v11 = vunpack.i.h.bf16 %v2217_v22  ;;  %v2218_v4 = vunpack.i.l.bf16 %v2217_v22  ;;  %v2212_v56 = vpop.permute.xlu0 %2211  ;;  %v1866_v62 = vpack.c.bf16 %v991_v53, %v989_v23 }
 0x13c   : > { %2506 = vrot.lane.b32.xlu1 %v3202_v31, %s2745_s14  ;;  %v2214_v51 = vunpack.i.h.bf16 %v2212_v56  ;;  %v2213_v63 = vunpack.i.l.bf16 %v2212_v56 }
 0x13d   : > { %v988_v47 = vsel %vm971_vm1, %v2218_v4, %v2203_v21  ;;  %v990_v14 = vsel %vm971_vm1, %v2219_v11, %v2208_v33  ;;  %2501 = vrot.lane.b32.xlu0 %v3184_v10, %s2745_s14  ;;  %1867 = vmatprep.subr.bf16.mxu0 %v1866_v62 }
 0x13e   : > { %v2227_v57 = vpop.permute.xlu1 %2226  ;;  %v1868_v39 = vpack.c.bf16 %v990_v14, %v988_v47  ;;  %v670_v46 = vsel %vm653_vm0, %v2213_v63, %v2193_v29  ;;  %v672_v32 = vsel %vm653_vm0, %v2214_v51, %v2198_v2  ;;  %v1608_v47 = vld [vmem:[%s3627_s3 + $0x8] sm:$0xff] }
 0x13f   : > { %v2229_v61 = vunpack.i.h.bf16 %v2227_v57  ;;  %v2228_v41 = vunpack.i.l.bf16 %v2227_v57  ;;  %v2222_v31 = vpop.permute.xlu0 %2221  ;;  %v1804_v0 = vpack.c.bf16 %v672_v32, %v670_v46 }
 0x140   : > { %2516 = vrot.lane.b32.xlu1 %v3220_v55, %s2745_s14  ;;  %1869 = vmatpush1.bf16.msra.mxu0 %v1868_v39  ;;  %v2224_v38 = vunpack.i.h.bf16 %v2222_v31  ;;  %v2223_v3 = vunpack.i.l.bf16 %v2222_v31 }
 0x141   : > { %v677_v48 = vsel %vm653_vm0, %v2228_v41, %v2229_v61  ;;  %2511 = vrot.lane.b32.xlu0 %v3197_v26, %s2745_s14  ;;  %1805 = vmatpush1.bf16.msra.mxu1 %v1804_v0 }
 0x142   : > { %v2237_v10 = vpop.permute.xlu1 %2236  ;;  %v675_v52 = vsel %vm653_vm0, %v2223_v3, %v2224_v38 }
 0x143   : > { %v2239_v45 = vunpack.i.h.bf16 %v2237_v10  ;;  %v2238_v27 = vunpack.i.l.bf16 %v2237_v10  ;;  %v2232_v2 = vpop.permute.xlu0 %2231  ;;  %v1806_v55 = vpack.c.bf16 %v677_v48, %v675_v52 }
 0x144   : > { %2526 = vrot.lane.b32.xlu1 %v3233_v7, %s2745_s14  ;;  %v2234_v58 = vunpack.i.h.bf16 %v2232_v2  ;;  %v2233_v29 = vunpack.i.l.bf16 %v2232_v2 }
 0x145   : > { %v995_v40 = vsel %vm971_vm1, %v2238_v27, %v2239_v45  ;;  %2521 = vrot.lane.b32.xlu0 %v3238_v17, %s2745_s14  ;;  %1807 = vmatprep.subr.bf16.mxu1 %v1806_v55 }
 0x146   : > { %v2247_v26 = vpop.permute.xlu1 %2246  ;;  %v993_v33 = vsel %vm971_vm1, %v2233_v29, %v2234_v58 }
 0x147   : > { %v2249_v12 = vunpack.i.h.bf16 %v2247_v26  ;;  %v2248_v8 = vunpack.i.l.bf16 %v2247_v26  ;;  %v2242_v37 = vpop.permute.xlu0 %2241  ;;  %v1870_v1 = vpack.c.bf16 %v995_v40, %v993_v33 }
 0x148   : > { %2536 = vrot.lane.b32.xlu1 %v3274_v19, %s2745_s14  ;;  %v2244_v7 = vunpack.i.h.bf16 %v2242_v37  ;;  %v2243_v42 = vunpack.i.l.bf16 %v2242_v37  ;;  %v2746_v19 = vmov 0  }
 0x149   : > { %v992_v60 = vsel %vm971_vm1, %v2248_v8, %v2233_v29  ;;  %v994_v21 = vsel %vm971_vm1, %v2249_v12, %v2238_v27  ;;  %2531 = vrot.lane.b32.xlu0 %v3256_v50, %s2745_s14  ;;  %1871 = vmatprep.subr.bf16.mxu0 %v1870_v1 }
 0x14a   : > { %v2257_v17 = vpop.permute.xlu1 %2256  ;;  %v1872_v53 = vpack.c.bf16 %v994_v21, %v992_v60  ;;  %v674_v4 = vsel %vm653_vm0, %v2243_v42, %v2223_v3  ;;  %v676_v23 = vsel %vm653_vm0, %v2244_v7, %v2228_v41  ;;  %2551 = vset.pattern.permute.xlu1 %v2746_v19  ;;  %2550 = vset.pattern.permute.xlu0 %v2746_v19 }
 0x14b   : > { %v2259_v22 = vunpack.i.h.bf16 %v2257_v17  ;;  %v2258_v11 = vunpack.i.l.bf16 %v2257_v17  ;;  %v2252_v56 = vpop.permute.xlu0 %2251  ;;  %v1808_v62 = vpack.c.bf16 %v676_v23, %v674_v4 }
 0x14c   : > { %2546 = vrot.lane.b32.xlu1 %v3288_v30, %s2745_s14  ;;  %1873 = vmatpush1.bf16.msra.mxu0 %v1872_v53  ;;  %v2254_v51 = vunpack.i.h.bf16 %v2252_v56  ;;  %v2253_v50 = vunpack.i.l.bf16 %v2252_v56  ;;  %v1607_v30 = vld [vmem:[%s3627_s3] sm:$0xff] }
 0x14d   : > { %v681_v63 = vsel %vm653_vm0, %v2258_v11, %v2259_v22  ;;  %2541 = vrot.lane.b32.xlu0 %v3269_v16, %s2745_s14  ;;  %1809 = vmatpush1.bf16.msra.mxu1 %v1808_v62 }
 0x14e   : > { %v2267_v14 = vpop.permute.xlu1 %2266  ;;  %v679_v61 = vsel %vm653_vm0, %v2253_v50, %v2254_v51 }
 0x14f   : > { %v2269_v57 = vunpack.i.h.bf16 %v2267_v14  ;;  %v2268_v39 = vunpack.i.l.bf16 %v2267_v14  ;;  %v2262_v41 = vpop.permute.xlu0 %2261  ;;  %v1810_v46 = vpack.c.bf16 %v681_v63, %v679_v61 }
 0x150   : > { %1616 = vperm.xlu1 %2551, %v1608_v47   ;;  %v2264_v32 = vunpack.i.h.bf16 %v2262_v41  ;;  %v2263_v31 = vunpack.i.l.bf16 %v2262_v41 }
 0x151   : > { %v999_v0 = vsel %vm971_vm1, %v2268_v39, %v2269_v57  ;;  %1811 = vmatprep.subr.bf16.mxu1 %v1810_v46  ;;  %1611 = vperm.xlu0 %2550, %v1607_v30   ;;  %v1818_v46 = vpack.c.bf16 %v3012_v9, %v3023_v18  ;;  %v1820_v9 = vpack.c.bf16 %v3036_v28, %v3019_v15 }
 0x152   : > { %v2277_v38 = vpop.permute.xlu1 %2276  ;;  %v997_v48 = vsel %vm971_vm1, %v2263_v31, %v2264_v32  ;;  %v1824_v28 = vpack.c.bf16 %v3058_v43, %v3029_v24 }
 0x153   : > { %v2279_v16 = vunpack.i.h.bf16 %v2277_v38  ;;  %v2278_v3 = vunpack.i.l.bf16 %v2277_v38  ;;  %v2272_v10 = vpop.permute.xlu0 %2271  ;;  %v1874_v45 = vpack.c.bf16 %v999_v0, %v997_v48  ;;  %v873_v48 = vld [vmem:[#allocation7 + $0x20] sm:$0xff] }
 0x154   : > { %v2274_v27 = vunpack.i.h.bf16 %v2272_v10  ;;  %v2273_v52 = vunpack.i.l.bf16 %v2272_v10 }
 0x155   : > { %v996_v2 = vsel %vm971_vm1, %v2278_v3, %v2263_v31  ;;  %v998_v55 = vsel %vm971_vm1, %v2279_v16, %v2268_v39  ;;  %1875 = vmatprep.subr.bf16.mxu0 %v1874_v45 }
 0x156   : > { %v2287_v58 = vpop.permute.xlu1 %2286  ;;  %v1876_v29 = vpack.c.bf16 %v998_v55, %v996_v2  ;;  %v678_v12 = vsel %vm653_vm0, %v2273_v52, %v2253_v50  ;;  %v680_v8 = vsel %vm653_vm0, %v2274_v27, %v2258_v11  ;;  %v507_v2 = vld [vmem:[#allocation7 + $0x10] sm:$0xff]  ;;  %v1822_v55 = vpack.c.bf16 %v3045_v36, %v3031_v25  ;;  %v508_v36 = vld [vmem:[#allocation7 + $0x18] sm:$0xff] }
 0x157   : > { %v2289_v40 = vunpack.i.h.bf16 %v2287_v58  ;;  %v2288_v26 = vunpack.i.l.bf16 %v2287_v58  ;;  %v2282_v33 = vpop.permute.xlu0 %2281  ;;  %v1812_v37 = vpack.c.bf16 %v680_v8, %v678_v12  ;;  %v874_v8 = vld [vmem:[#allocation7 + $0x28] sm:$0xff]  ;;  %v1826_v25 = vpack.c.bf16 %v3076_v54, %v3084_v59 }
 0x158   : > { %1877 = vmatpush1.bf16.msra.mxu0 %v1876_v29  ;;  %v2284_v1 = vunpack.i.h.bf16 %v2282_v33  ;;  %v2283_v7 = vunpack.i.l.bf16 %v2282_v33  ;;  %v1828_v59 = vpack.c.bf16 %v3104_v6, %v3102_v5  ;;  %v1832_v6 = vpack.c.bf16 %v3140_v35, %v3138_v34  ;;  %v3696_v34 = vld [vmem:[#allocation20_spill] sm:$0xff]  ;;  %v3697_v35 = vld [vmem:[#allocation19_spill] sm:$0xff] }
 0x159   : > { %v685_v42 = vsel %vm653_vm0, %v2288_v26, %v2289_v40  ;;  %1813 = vmatpush1.bf16.msra.mxu1 %v1812_v37  ;;  %v3693_v40 = vmov 0.0  }
 0x15a   : > { %v2297_v60 = vpop.permute.xlu1 %2296  ;;  %v683_v53 = vsel %vm653_vm0, %v2283_v7, %v2284_v1 }
 0x15b   : > { %v2299_v21 = vunpack.i.h.bf16 %v2297_v60  ;;  %v2298_v17 = vunpack.i.l.bf16 %v2297_v60  ;;  %v2292_v22 = vpop.permute.xlu0 %2291  ;;  %v1814_v4 = vpack.c.bf16 %v685_v42, %v683_v53 }
 0x15c   : > { %v2294_v23 = vunpack.i.h.bf16 %v2292_v22  ;;  %v2293_v19 = vunpack.i.l.bf16 %v2292_v22 }
 0x15d   : > { %v1003_v56 = vsel %vm971_vm1, %v2298_v17, %v2299_v21  ;;  %1815 = vmatprep.subr.bf16.mxu1 %v1814_v4  ;;  %v1830_v4 = vpack.c.bf16 %v3114_v13, %v3120_v20  ;;  %v1834_v20 = vpack.c.bf16 %v3150_v44, %v3156_v49 }
 0x15e   : > { %v2307_v11 = vpop.permute.xlu1 %2306  ;;  %v1001_v50 = vsel %vm971_vm1, %v2293_v19, %v2294_v23 }
 0x15f   : > { %v2309_v62 = vunpack.i.h.bf16 %v2307_v11  ;;  %v2308_v51 = vunpack.i.l.bf16 %v2307_v11  ;;  %v2302_v63 = vpop.permute.xlu0 %2301  ;;  %v1878_v47 = vpack.c.bf16 %v1003_v56, %v1001_v50 }
 0x160   : > { %v2304_v14 = vunpack.i.h.bf16 %v2302_v63  ;;  %v2303_v57 = vunpack.i.l.bf16 %v2302_v63 }
 0x161   : > { %v1000_v39 = vsel %vm971_vm1, %v2308_v51, %v2293_v19  ;;  %v1002_v61 = vsel %vm971_vm1, %v2309_v62, %v2298_v17  ;;  %1879 = vmatprep.subr.bf16.mxu0 %v1878_v47 }
 0x162   : > { %v2317_v30 = vpop.permute.xlu1 %2316  ;;  %v1880_v41 = vpack.c.bf16 %v1002_v61, %v1000_v39  ;;  %v682_v0 = vsel %vm653_vm0, %v2303_v57, %v2283_v7  ;;  %v684_v38 = vsel %vm653_vm0, %v2304_v14, %v2288_v26 }
 0x163   : > { %v2319_v32 = vunpack.i.h.bf16 %v2317_v30  ;;  %v2318_v31 = vunpack.i.l.bf16 %v2317_v30  ;;  %v2312_v16 = vpop.permute.xlu0 %2311  ;;  %v1816_v3 = vpack.c.bf16 %v684_v38, %v682_v0  ;;  %v3695_v0 = vld [vmem:[#allocation18_spill] sm:$0xff] }
 0x164   : > { %1881 = vmatpush1.bf16.msra.mxu0 %v1880_v41  ;;  %v2314_v10 = vunpack.i.h.bf16 %v2312_v16  ;;  %v2313_v45 = vunpack.i.l.bf16 %v2312_v16  ;;  %v1838_v16 = vpack.c.bf16 %v3697_v35, %v3696_v34 }
 0x165   : > { %v1220_v27 = vsel %vm1216_vm2, %v2318_v31, %v2319_v32  ;;  %1817 = vmatpush1.bf16.msra.mxu1 %v1816_v3 }
 0x166   : > { %v2327_v52 = vpop.permute.xlu1 %2326  ;;  %1819 = vmatprep.subr.bf16.mxu1 %v1818_v46  ;;  %v1218_v18 = vsel %vm1216_vm2, %v2313_v45, %v2314_v10 }
 0x167   : > { %1101 = vmatmul.mubr.f32.vlgmr.msra.gmra.mrb[0].mxu0 %v873_v48  ;;  %v2322_v58 = vpop.permute.xlu0 %2321  ;;  %v1882_v29 = vpack.c.bf16 %v1220_v27, %v1218_v18  ;;  %v2329_v33 = vunpack.i.h.bf16 %v2327_v52  ;;  %v2328_v37 = vunpack.i.l.bf16 %v2327_v52 }
 0x168   : > { %1106 = vmatprep.mubr.f32.mxu0 %v3693_v40  ;;  %v2324_v26 = vunpack.i.h.bf16 %v2322_v58  ;;  %v2323_v12 = vunpack.i.l.bf16 %v2322_v58  ;;  %783 = vmatmul.mubr.f32.vlgmr.msra.gmra.mrb[0].mxu1 %v507_v2  ;;  %v3699_v58 = vld [vmem:[#allocation22_spill] sm:$0xff] }
 0x169   : > { %1883 = vmatprep.subr.bf16.mxu0 %v1882_v29  ;;  %1821 = vmatpush1.bf16.msra.mxu1 %v1820_v9  ;;  %v1222_v54 = vsel %vm1216_vm2, %v2328_v37, %v2329_v33 }
 0x16a   : > { %v2337_v15 = vpop.permute.xlu1 %2336  ;;  %v1219_v1 = vsel %vm1216_vm2, %v2324_v26, %v2318_v31  ;;  %v1217_v7 = vsel %vm1216_vm2, %v2323_v12, %v2313_v45  ;;  %1823 = vmatprep.subr.bf16.mxu1 %v1822_v55  ;;  %788 = vmatprep.mubr.f32.mxu1 %v3693_v40  ;;  %v3694_v31 = vld [vmem:[#allocation17_spill] sm:$0xff]  ;;  %v3700_v26 = vld [vmem:[#allocation24_spill] sm:$0xff]  ;;  %v3701_v12 = vld [vmem:[#allocation23_spill] sm:$0xff] }
 0x16b   : > { %v2339_v42 = vunpack.i.h.bf16 %v2337_v15  ;;  %v2338_v60 = vunpack.i.l.bf16 %v2337_v15  ;;  %v1884_v21 = vpack.c.bf16 %v1219_v1, %v1217_v7  ;;  %v2332_v17 = vpop.permute.xlu0 %2331  ;;  %1107 = vmatmul.mubr.f32.gmra.mrb[2].mxu0 %v874_v8  ;;  %v1836_v38 = vpack.c.bf16 %v3695_v0, %v3694_v31  ;;  %v3698_v55 = vld [vmem:[#allocation21_spill] sm:$0xff] }
 0x16c   : > { %v2334_v22 = vunpack.i.h.bf16 %v2332_v17  ;;  %v2333_v24 = vunpack.i.l.bf16 %v2332_v17  ;;  %789 = vmatmul.mubr.f32.gmra.mrb[2].mxu1 %v508_v36  ;;  %1345 = vmatprep.mubr.f32.mxu0 %v3693_v40  ;;  %v1840_v29 = vpack.c.bf16 %v3699_v58, %v3698_v55  ;;  %v1842_v8 = vpack.c.bf16 %v3701_v12, %v3700_v26  ;;  %v3702_v17 = vld [vmem:[#allocation25_spill] sm:$0xff] }
 0x16d   : > { %v1221_v53 = vsel %vm1216_vm2, %v2338_v60, %v2328_v37  ;;  %1885 = vmatpush1.bf16.msra.mxu0 %v1884_v21  ;;  %1825 = vmatpush1.bf16.msra.mxu1 %v1824_v28 }
 0x16e   : > { %v2347_v43 = vpop.permute.xlu1 %2346  ;;  %v1223_v23 = vsel %vm1216_vm2, %v2339_v42, %v2333_v24  ;;  %1827 = vmatprep.subr.bf16.mxu1 %v1826_v25  ;;  %v1224_v11 = vsel %vm1216_vm2, %v2333_v24, %v2334_v22  ;;  %859 = vmatprep.mubr.f32.mxu1 %v3693_v40 }
 0x16f   : > { %v2349_v19 = vunpack.i.h.bf16 %v2347_v43  ;;  %v2348_v56 = vunpack.i.l.bf16 %v2347_v43  ;;  %v1888_v62 = vpack.c.bf16 %v1223_v23, %v1221_v53  ;;  %v2342_v51 = vpop.permute.xlu0 %2341  ;;  %v1886_v50 = vpack.c.bf16 %v1224_v11, %v1222_v54  ;;  %v3703_v53 = vld [vmem:[#allocation26_spill] sm:$0xff]  ;;  %v3704_v43 = vld [vmem:[#allocation28_spill] sm:$0xff]  ;;  %v3705_v54 = vld [vmem:[#allocation27_spill] sm:$0xff] }
 0x170   : > { %v2344_v63 = vunpack.i.h.bf16 %v2342_v51  ;;  %v2343_v47 = vunpack.i.l.bf16 %v2342_v51  ;;  %v1844_v22 = vpack.c.bf16 %v3703_v53, %v3702_v17 }
 0x171   : > { %v1228_v14 = vsel %vm1216_vm2, %v2348_v56, %v2349_v19  ;;  %1887 = vmatprep.subr.bf16.mxu0 %v1886_v50  ;;  %1829 = vmatpush1.bf16.msra.mxu1 %v1828_v59  ;;  %v1846_v59 = vpack.c.bf16 %v3705_v54, %v3704_v43  ;;  %v3706_v50 = vld [vmem:[#allocation29_spill] sm:$0xff] }
 0x172   : > { %v2357_v5 = vpop.permute.xlu1 %2356  ;;  %1889 = vmatpush1.bf16.msra.mxu0 %v1888_v62  ;;  %1831 = vmatprep.subr.bf16.mxu1 %v1830_v4  ;;  %v1226_v13 = vsel %vm1216_vm2, %v2343_v47, %v2344_v63  ;;  %v3707_v63 = vld [vmem:[#allocation30_spill] sm:$0xff] }
 0x173   : > { %v2352_v57 = vpop.permute.xlu0 %2351  ;;  %v1890_v39 = vpack.c.bf16 %v1228_v14, %v1226_v13  ;;  %v2359_v41 = vunpack.i.h.bf16 %v2357_v5  ;;  %v2358_v46 = vunpack.i.l.bf16 %v2357_v5 }
 0x174   : > { %v2354_v61 = vunpack.i.h.bf16 %v2352_v57  ;;  %v2353_v30 = vunpack.i.l.bf16 %v2352_v57 }
 0x175   : > { %1891 = vmatprep.subr.bf16.mxu0 %v1890_v39  ;;  %1833 = vmatpush1.bf16.msra.mxu1 %v1832_v6  ;;  %v1230_v18 = vsel %vm1216_vm2, %v2358_v46, %v2359_v41 }
 0x176   : > { %v2367_v32 = vpop.permute.xlu1 %2366  ;;  %v1227_v3 = vsel %vm1216_vm2, %v2354_v61, %v2348_v56  ;;  %v1225_v48 = vsel %vm1216_vm2, %v2353_v30, %v2343_v47  ;;  %1835 = vmatprep.subr.bf16.mxu1 %v1834_v20  ;;  %v1848_v47 = vpack.c.bf16 %v3707_v63, %v3706_v50 }
 0x177   : > { %v2369_v44 = vunpack.i.h.bf16 %v2367_v32  ;;  %v2368_v49 = vunpack.i.l.bf16 %v2367_v32  ;;  %v1892_v10 = vpack.c.bf16 %v1227_v3, %v1225_v48  ;;  %v2362_v45 = vpop.permute.xlu0 %2361 }
 0x178   : > { %v2364_v52 = vunpack.i.h.bf16 %v2362_v45  ;;  %v2363_v2 = vunpack.i.l.bf16 %v2362_v45  ;;  %v505_v45 = vld [vmem:[#allocation7 + $0x8] sm:$0xff] }
 0x179   : > { %v1229_v27 = vsel %vm1216_vm2, %v2368_v49, %v2358_v46  ;;  %1893 = vmatpush1.bf16.msra.mxu0 %v1892_v10  ;;  %1837 = vmatpush1.bf16.msra.mxu1 %v1836_v38  ;;  %v504_v46 = vld [vmem:[#allocation7] sm:$0xff] }
 0x17a   : > { %v2377_v9 = vpop.permute.xlu1 %2376  ;;  %v1231_v33 = vsel %vm1216_vm2, %v2369_v44, %v2363_v2  ;;  %1839 = vmatprep.subr.bf16.mxu1 %v1838_v16  ;;  %v1232_v28 = vsel %vm1216_vm2, %v2363_v2, %v2364_v52 }
 0x17b   : > { %v2379_v37 = vunpack.i.h.bf16 %v2377_v9  ;;  %v2378_v15 = vunpack.i.l.bf16 %v2377_v9  ;;  %v1896_v25 = vpack.c.bf16 %v1231_v33, %v1229_v27  ;;  %v2372_v36 = vpop.permute.xlu0 %2371  ;;  %v1894_v1 = vpack.c.bf16 %v1232_v28, %v1230_v18 }
 0x17c   : > { %v2374_v7 = vunpack.i.h.bf16 %v2372_v36  ;;  %v2373_v42 = vunpack.i.l.bf16 %v2372_v36 }
 0x17d   : > { %v1236_v60 = vsel %vm1216_vm2, %v2378_v15, %v2379_v37  ;;  %1895 = vmatprep.subr.bf16.mxu0 %v1894_v1  ;;  %1841 = vmatpush1.bf16.msra.mxu1 %v1840_v29 }
 0x17e   : > { %v2387_v21 = vpop.permute.xlu1 %2386  ;;  %1897 = vmatpush1.bf16.msra.mxu0 %v1896_v25  ;;  %1843 = vmatprep.subr.bf16.mxu1 %v1842_v8  ;;  %v1234_v24 = vsel %vm1216_vm2, %v2373_v42, %v2374_v7 }
 0x17f   : > { %v2382_v4 = vpop.permute.xlu0 %2381  ;;  %v1898_v23 = vpack.c.bf16 %v1236_v60, %v1234_v24  ;;  %v2389_v11 = vunpack.i.h.bf16 %v2387_v21  ;;  %v2388_v62 = vunpack.i.l.bf16 %v2387_v21 }
 0x180   : > { %v2384_v19 = vunpack.i.h.bf16 %v2382_v4  ;;  %v2383_v56 = vunpack.i.l.bf16 %v2382_v4 }
 0x181   : > { %1899 = vmatprep.subr.bf16.mxu0 %v1898_v23  ;;  %1845 = vmatpush1.bf16.msra.mxu1 %v1844_v22  ;;  %v1238_v32 = vsel %vm1216_vm2, %v2388_v62, %v2389_v11  ;;  %v1118_v11 = vld [vmem:[#allocation7 + $0x30] sm:$0xff] }
 0x182   : > { %v2397_v51 = vpop.permute.xlu1 %2396  ;;  %v1235_v14 = vsel %vm1216_vm2, %v2384_v19, %v2378_v15  ;;  %v1233_v5 = vsel %vm1216_vm2, %v2383_v56, %v2373_v42  ;;  %1847 = vmatprep.subr.bf16.mxu1 %v1846_v59 }
 0x183   : > { %v2399_v6 = vunpack.i.h.bf16 %v2397_v51  ;;  %v2398_v13 = vunpack.i.l.bf16 %v2397_v51  ;;  %v1900_v20 = vpack.c.bf16 %v1235_v14, %v1233_v5  ;;  %v2392_v57 = vpop.permute.xlu0 %2391 }
 0x184   : > { %v2394_v61 = vunpack.i.h.bf16 %v2392_v57  ;;  %v2393_v30 = vunpack.i.l.bf16 %v2392_v57 }
 0x185   : > { %v1237_v39 = vsel %vm1216_vm2, %v2398_v13, %v2388_v62  ;;  %1901 = vmatpush1.bf16.msra.mxu0 %v1900_v20  ;;  %1849 = vmatpush1.bf16.msra.mxu1 %v1848_v47 }
 0x186   : > { %v2407_v41 = vpop.permute.xlu1 %2406  ;;  %v1239_v31 = vsel %vm1216_vm2, %v2399_v6, %v2393_v30  ;;  %v1240_v34 = vsel %vm1216_vm2, %v2393_v30, %v2394_v61 }
 0x187   : > { %v2409_v0 = vunpack.i.h.bf16 %v2407_v41  ;;  %v2408_v38 = vunpack.i.l.bf16 %v2407_v41  ;;  %v1904_v35 = vpack.c.bf16 %v1239_v31, %v1237_v39  ;;  %v2402_v16 = vpop.permute.xlu0 %2401  ;;  %v1902_v3 = vpack.c.bf16 %v1240_v34, %v1238_v32  ;;  %v1119_v39 = vld [vmem:[#allocation7 + $0x38] sm:$0xff] }
 0x188   : > { %v2404_v48 = vunpack.i.h.bf16 %v2402_v16  ;;  %v2403_v44 = vunpack.i.l.bf16 %v2402_v16  ;;  %860 = vmatmul.mubr.f32.vlgmr.msra.gmra.mrb[0].mxu1 %v504_v46 }
 0x189   : > { %v1244_v49 = vsel %vm1216_vm2, %v2408_v38, %v2409_v0  ;;  %1903 = vmatprep.subr.bf16.mxu0 %v1902_v3  ;;  %865 = vmatprep.mubr.f32.mxu1 %v3693_v40 }
 0x18a   : > { %v2417_v10 = vpop.permute.xlu1 %2416  ;;  %1905 = vmatpush1.bf16.msra.mxu0 %v1904_v35  ;;  %v1242_v27 = vsel %vm1216_vm2, %v2403_v44, %v2404_v48 }
 0x18b   : > { %v2412_v52 = vpop.permute.xlu0 %2411  ;;  %v1906_v2 = vpack.c.bf16 %v1244_v49, %v1242_v27  ;;  %v2419_v55 = vunpack.i.h.bf16 %v2417_v10  ;;  %v2418_v58 = vunpack.i.l.bf16 %v2417_v10 }
 0x18c   : > { %v2414_v9 = vunpack.i.h.bf16 %v2412_v52  ;;  %v2413_v18 = vunpack.i.l.bf16 %v2412_v52  ;;  %866 = vmatmul.mubr.f32.gmra.mrb[2].mxu1 %v505_v45 }
 0x18d   : > { %1907 = vmatprep.subr.bf16.mxu0 %v1906_v2  ;;  %1596 = vmatprep.mubr.f32.mxu1 %v3693_v40  ;;  %v1246_v7 = vsel %vm1216_vm2, %v2418_v58, %v2419_v55 }
 0x18e   : > { %v2427_v29 = vpop.permute.xlu1 %2426  ;;  %v1243_v26 = vsel %vm1216_vm2, %v2414_v9, %v2408_v38  ;;  %v1241_v12 = vsel %vm1216_vm2, %v2413_v18, %v2403_v44 }
 0x18f   : > { %v2429_v8 = vunpack.i.h.bf16 %v2427_v29  ;;  %v2428_v33 = vunpack.i.l.bf16 %v2427_v29  ;;  %v1908_v37 = vpack.c.bf16 %v1243_v26, %v1241_v12  ;;  %v2422_v15 = vpop.permute.xlu0 %2421 }
 0x190   : > { %v2424_v25 = vunpack.i.h.bf16 %v2422_v15  ;;  %v2423_v36 = vunpack.i.l.bf16 %v2422_v15 }
 0x191   : > { %v1245_v28 = vsel %vm1216_vm2, %v2428_v33, %v2418_v58  ;;  %1909 = vmatpush1.bf16.msra.mxu0 %v1908_v37 }
 0x192   : > { %v2437_v1 = vpop.permute.xlu1 %2436  ;;  %v1247_v42 = vsel %vm1216_vm2, %v2429_v8, %v2423_v36  ;;  %v1248_v17 = vsel %vm1216_vm2, %v2423_v36, %v2424_v25 }
 0x193   : > { %v2439_v60 = vunpack.i.h.bf16 %v2437_v1  ;;  %v2438_v21 = vunpack.i.l.bf16 %v2437_v1  ;;  %v1912_v53 = vpack.c.bf16 %v1247_v42, %v1245_v28  ;;  %v2432_v22 = vpop.permute.xlu0 %2431  ;;  %v1910_v24 = vpack.c.bf16 %v1248_v17, %v1246_v7 }
 0x194   : > { %v2434_v43 = vunpack.i.h.bf16 %v2432_v22  ;;  %v2433_v54 = vunpack.i.l.bf16 %v2432_v22 }
 0x195   : > { %v1465_v59 = vsel %vm1461_vm3, %v2438_v21, %v2439_v60  ;;  %1911 = vmatprep.subr.bf16.mxu0 %v1910_v24 }
 0x196   : > { %v2447_v4 = vpop.permute.xlu1 %2446  ;;  %1913 = vmatpush1.bf16.msra.mxu0 %v1912_v53  ;;  %v1463_v23 = vsel %vm1461_vm3, %v2433_v54, %v2434_v43 }
 0x197   : > { %v2442_v19 = vpop.permute.xlu0 %2441  ;;  %v1914_v56 = vpack.c.bf16 %v1465_v59, %v1463_v23  ;;  %v2449_v50 = vunpack.i.h.bf16 %v2447_v4  ;;  %v2448_v63 = vunpack.i.l.bf16 %v2447_v4 }
 0x198   : > { %v2444_v62 = vunpack.i.h.bf16 %v2442_v19  ;;  %v2443_v51 = vunpack.i.l.bf16 %v2442_v19 }
 0x199   : > { %1915 = vmatprep.subr.bf16.mxu0 %v1914_v56  ;;  %1946 = vmatprep.subr.bf16.mxu1 %v1914_v56  ;;  %v1467_v32 = vsel %vm1461_vm3, %v2448_v63, %v2449_v50 }
 0x19a   : > { %v2457_v47 = vpop.permute.xlu1 %2456  ;;  %v1464_v14 = vsel %vm1461_vm3, %v2444_v62, %v2438_v21  ;;  %v1462_v5 = vsel %vm1461_vm3, %v2443_v51, %v2433_v54  ;;  %1346 = vmatmul.mubr.f32.vlgmr.msra.gmra.mrb[0].mxu0 %v1118_v11 }
 0x19b   : > { %v2459_v6 = vunpack.i.h.bf16 %v2457_v47  ;;  %v2458_v13 = vunpack.i.l.bf16 %v2457_v47  ;;  %v1916_v20 = vpack.c.bf16 %v1464_v14, %v1462_v5  ;;  %v2452_v57 = vpop.permute.xlu0 %2451  ;;  %1351 = vmatprep.mubr.f32.mxu0 %v3693_v40 }
 0x19c   : > { %v2454_v30 = vunpack.i.h.bf16 %v2452_v57  ;;  %v2453_v41 = vunpack.i.l.bf16 %v2452_v57 }
 0x19d   : > { %v1466_v61 = vsel %vm1461_vm3, %v2458_v13, %v2448_v63  ;;  %1917 = vmatpush1.bf16.msra.mxu0 %v1916_v20  ;;  %1954 = vmatpush1.bf16.msra.mxu1 %v1916_v20 }
 0x19e   : > { %v2467_v46 = vpop.permute.xlu1 %2466  ;;  %v1468_v31 = vsel %vm1461_vm3, %v2459_v6, %v2453_v41  ;;  %v1469_v34 = vsel %vm1461_vm3, %v2453_v41, %v2454_v30  ;;  %1352 = vmatmul.mubr.f32.gmra.mrb[2].mxu0 %v1119_v39 }
 0x19f   : > { %v2469_v0 = vunpack.i.h.bf16 %v2467_v46  ;;  %v2468_v38 = vunpack.i.l.bf16 %v2467_v46  ;;  %v1920_v35 = vpack.c.bf16 %v1468_v31, %v1466_v61  ;;  %v2462_v16 = vpop.permute.xlu0 %2461  ;;  %v1918_v3 = vpack.c.bf16 %v1469_v34, %v1467_v32  ;;  %1590 = vmatprep.mubr.f32.mxu0 %v3693_v40 }
 0x1a0   : > { %v2464_v48 = vunpack.i.h.bf16 %v2462_v16  ;;  %v2463_v44 = vunpack.i.l.bf16 %v2462_v16 }
 0x1a1   : > { %v1473_v49 = vsel %vm1461_vm3, %v2468_v38, %v2469_v0  ;;  %1919 = vmatprep.subr.bf16.mxu0 %v1918_v3  ;;  %1947 = vmatprep.subr.bf16.mxu1 %v1918_v3 }
 0x1a2   : > { %v2477_v10 = vpop.permute.xlu1 %2476  ;;  %1921 = vmatpush1.bf16.msra.mxu0 %v1920_v35  ;;  %1955 = vmatpush1.bf16.msra.mxu1 %v1920_v35  ;;  %v1471_v45 = vsel %vm1461_vm3, %v2463_v44, %v2464_v48 }
 0x1a3   : > { %v2472_v27 = vpop.permute.xlu0 %2471  ;;  %v1922_v52 = vpack.c.bf16 %v1473_v49, %v1471_v45  ;;  %v2479_v18 = vunpack.i.h.bf16 %v2477_v10  ;;  %v2478_v55 = vunpack.i.l.bf16 %v2477_v10 }
 0x1a4   : > { %v2474_v2 = vunpack.i.h.bf16 %v2472_v27  ;;  %v2473_v9 = vunpack.i.l.bf16 %v2472_v27 }
 0x1a5   : > { %1923 = vmatprep.subr.bf16.mxu0 %v1922_v52  ;;  %1948 = vmatprep.subr.bf16.mxu1 %v1922_v52  ;;  %v1475_v36 = vsel %vm1461_vm3, %v2478_v55, %v2479_v18 }
 0x1a6   : > { %v2487_v40 = vpop.permute.xlu1 %2486  ;;  %v1472_v58 = vsel %vm1461_vm3, %v2474_v2, %v2468_v38  ;;  %v1470_v29 = vsel %vm1461_vm3, %v2473_v9, %v2463_v44 }
 0x1a7   : > { %v2489_v26 = vunpack.i.h.bf16 %v2487_v40  ;;  %v2488_v12 = vunpack.i.l.bf16 %v2487_v40  ;;  %v1924_v8 = vpack.c.bf16 %v1472_v58, %v1470_v29  ;;  %v2482_v33 = vpop.permute.xlu0 %2481 }
 0x1a8   : > { %v2484_v15 = vunpack.i.h.bf16 %v2482_v33  ;;  %v2483_v28 = vunpack.i.l.bf16 %v2482_v33 }
 0x1a9   : > { %v1474_v37 = vsel %vm1461_vm3, %v2488_v12, %v2478_v55  ;;  %1925 = vmatpush1.bf16.msra.mxu0 %v1924_v8  ;;  %1956 = vmatpush1.bf16.msra.mxu1 %v1924_v8 }
 0x1aa   : > { %v2497_v25 = vpop.permute.xlu1 %2496  ;;  %v1476_v1 = vsel %vm1461_vm3, %v2489_v26, %v2483_v28  ;;  %v1477_v60 = vsel %vm1461_vm3, %v2483_v28, %v2484_v15 }
 0x1ab   : > { %v2499_v7 = vunpack.i.h.bf16 %v2497_v25  ;;  %v2498_v42 = vunpack.i.l.bf16 %v2497_v25  ;;  %v1928_v21 = vpack.c.bf16 %v1476_v1, %v1474_v37  ;;  %v2492_v17 = vpop.permute.xlu0 %2491  ;;  %v1926_v53 = vpack.c.bf16 %v1477_v60, %v1475_v36  ;;  %v1363_v36 = vld [vmem:[#allocation7 + $0x40] sm:$0xff]  ;;  %v1364_v1 = vld [vmem:[#allocation7 + $0x48] sm:$0xff] }
 0x1ac   : > { %v2494_v22 = vunpack.i.h.bf16 %v2492_v17  ;;  %v2493_v24 = vunpack.i.l.bf16 %v2492_v17 }
 0x1ad   : > { %v1481_v43 = vsel %vm1461_vm3, %v2498_v42, %v2499_v7  ;;  %1927 = vmatprep.subr.bf16.mxu0 %v1926_v53  ;;  %1949 = vmatprep.subr.bf16.mxu1 %v1926_v53 }
 0x1ae   : > { %v2507_v54 = vpop.permute.xlu1 %2506  ;;  %1929 = vmatpush1.bf16.msra.mxu0 %v1928_v21  ;;  %1957 = vmatpush1.bf16.msra.mxu1 %v1928_v21  ;;  %v1479_v59 = vsel %vm1461_vm3, %v2493_v24, %v2494_v22 }
 0x1af   : > { %v2502_v4 = vpop.permute.xlu0 %2501  ;;  %v1930_v23 = vpack.c.bf16 %v1481_v43, %v1479_v59  ;;  %v2509_v11 = vunpack.i.h.bf16 %v2507_v54  ;;  %v2508_v62 = vunpack.i.l.bf16 %v2507_v54 }
 0x1b0   : > { %v2504_v19 = vunpack.i.h.bf16 %v2502_v4  ;;  %v2503_v56 = vunpack.i.l.bf16 %v2502_v4 }
 0x1b1   : > { %1931 = vmatprep.subr.bf16.mxu0 %v1930_v23  ;;  %1950 = vmatprep.subr.bf16.mxu1 %v1930_v23  ;;  %v1483_v61 = vsel %vm1461_vm3, %v2508_v62, %v2509_v11 }
 0x1b2   : > { %v2517_v51 = vpop.permute.xlu1 %2516  ;;  %v1480_v50 = vsel %vm1461_vm3, %v2504_v19, %v2498_v42  ;;  %v1478_v63 = vsel %vm1461_vm3, %v2503_v56, %v2493_v24 }
 0x1b3   : > { %v2519_v47 = vunpack.i.h.bf16 %v2517_v51  ;;  %v2518_v14 = vunpack.i.l.bf16 %v2517_v51  ;;  %v1932_v5 = vpack.c.bf16 %v1480_v50, %v1478_v63  ;;  %v2512_v6 = vpop.permute.xlu0 %2511 }
 0x1b4   : > { %v2514_v20 = vunpack.i.h.bf16 %v2512_v6  ;;  %v2513_v57 = vunpack.i.l.bf16 %v2512_v6 }
 0x1b5   : > { %v1482_v13 = vsel %vm1461_vm3, %v2518_v14, %v2508_v62  ;;  %1933 = vmatpush1.bf16.msra.mxu0 %v1932_v5  ;;  %1958 = vmatpush1.bf16.msra.mxu1 %v1932_v5 }
 0x1b6   : > { %v2527_v39 = vpop.permute.xlu1 %2526  ;;  %v1484_v30 = vsel %vm1461_vm3, %v2519_v47, %v2513_v57  ;;  %v1485_v32 = vsel %vm1461_vm3, %v2513_v57, %v2514_v20 }
 0x1b7   : > { %v2529_v41 = vunpack.i.h.bf16 %v2527_v39  ;;  %v2528_v46 = vunpack.i.l.bf16 %v2527_v39  ;;  %v1936_v31 = vpack.c.bf16 %v1484_v30, %v1482_v13  ;;  %v2522_v0 = vpop.permute.xlu0 %2521  ;;  %v1934_v38 = vpack.c.bf16 %v1485_v32, %v1483_v61 }
 0x1b8   : > { %v2524_v34 = vunpack.i.h.bf16 %v2522_v0  ;;  %v2523_v35 = vunpack.i.l.bf16 %v2522_v0 }
 0x1b9   : > { %v1489_v16 = vsel %vm1461_vm3, %v2528_v46, %v2529_v41  ;;  %1935 = vmatprep.subr.bf16.mxu0 %v1934_v38  ;;  %1951 = vmatprep.subr.bf16.mxu1 %v1934_v38 }
 0x1ba   : > { %v2537_v3 = vpop.permute.xlu1 %2536  ;;  %1937 = vmatpush1.bf16.msra.mxu0 %v1936_v31  ;;  %1959 = vmatpush1.bf16.msra.mxu1 %v1936_v31  ;;  %v1487_v48 = vsel %vm1461_vm3, %v2523_v35, %v2524_v34 }
 0x1bb   : > { %v2532_v44 = vpop.permute.xlu0 %2531  ;;  %v1938_v49 = vpack.c.bf16 %v1489_v16, %v1487_v48  ;;  %v2539_v27 = vunpack.i.h.bf16 %v2537_v3  ;;  %v2538_v52 = vunpack.i.l.bf16 %v2537_v3 }
 0x1bc   : > { %v2534_v10 = vunpack.i.h.bf16 %v2532_v44  ;;  %v2533_v45 = vunpack.i.l.bf16 %v2532_v44 }
 0x1bd   : > { %1939 = vmatprep.subr.bf16.mxu0 %v1938_v49  ;;  %1952 = vmatprep.subr.bf16.mxu1 %v1938_v49  ;;  %v1491_v37 = vsel %vm1461_vm3, %v2538_v52, %v2539_v27 }
 0x1be   : > { %v2547_v2 = vpop.permute.xlu1 %2546  ;;  %v1488_v9 = vsel %vm1461_vm3, %v2534_v10, %v2528_v46  ;;  %v1486_v18 = vsel %vm1461_vm3, %v2533_v45, %v2523_v35 }
 0x1bf   : > { %v2549_v55 = vunpack.i.h.bf16 %v2547_v2  ;;  %v2548_v40 = vunpack.i.l.bf16 %v2547_v2  ;;  %v1940_v58 = vpack.c.bf16 %v1488_v9, %v1486_v18  ;;  %v2542_v29 = vpop.permute.xlu0 %2541 }
 0x1c0   : > { %v2544_v12 = vunpack.i.h.bf16 %v2542_v29  ;;  %v2543_v8 = vunpack.i.l.bf16 %v2542_v29 }
 0x1c1   : > { %v1490_v26 = vsel %vm1461_vm3, %v2548_v40, %v2538_v52  ;;  %1941 = vmatpush1.bf16.msra.mxu0 %v1940_v58  ;;  %1960 = vmatpush1.bf16.msra.mxu1 %v1940_v58 }
 0x1c2   : > { %v1492_v33 = vsel %vm1461_vm3, %v2549_v55, %v2543_v8  ;;  %v1493_v15 = vsel %vm1461_vm3, %v2543_v8, %v2544_v12 }
 0x1c3   : > { %v1944_v28 = vpack.c.bf16 %v1492_v33, %v1490_v26  ;;  %v1942_v25 = vpack.c.bf16 %v1493_v15, %v1491_v37 }
 0x1c5   : > { %1943 = vmatprep.subr.bf16.mxu0 %v1942_v25  ;;  %1953 = vmatprep.subr.bf16.mxu1 %v1942_v25 }
 0x1c6   : > { %1945 = vmatpush1.bf16.msra.mxu0 %v1944_v28  ;;  %1961 = vmatpush1.bf16.msra.mxu1 %v1944_v28 }
 0x1c9   : > { %1591 = vmatmul.mubr.f32.vlgmr.msra.gmra.mrb[0].mxu0 %v1363_v36  ;;  %1597 = vmatmul.mubr.f32.vlgmr.msra.gmra.mrb[4].mxu1 %v1364_v1 }
 0x1cf   : > { %v1617_v43 = vpop.permute.xlu1 %1616 }
 0x1d0   : > { %v1612_v54 = vpop.permute.xlu0 %1611 }
 0x25b   : > { %v861_v7 = vpop.f32.mrb[0].mxu1 }
 0x25c   : > { %v863_v42 = vpop.f32.mrb[1].mxu1 }
 0x25f   : > { %v867_v60 = vpop.f32.mrb[2].mxu1 }
 0x260   : > { %v869_v21 = vpop.f32.mrb[3].mxu1 }
 0x271   : > { %v1353_v17 = vpop.f32.mrb[2].mxu0 }
 0x272   : > { %v1964_v53 = vadd.f32 %v1353_v17, %v867_v60  ;;  %v1355_v22 = vpop.f32.mrb[3].mxu0 }
 0x273   : > { %v1966_v24 = vadd.f32 %v1355_v22, %v869_v21 }
 0x29c   : > { %v1592_v59 = vpop.f32.mrb[0].mxu0  ;;  %v1598_v4 = vpop.f32.mrb[4].mxu1 }
 0x29d   : > { %v1962_v23 = vadd.f32 %v1592_v59, %v861_v7  ;;  %v1965_v19 = vadd.f32 %v1964_v53, %v1598_v4  ;;  %v1594_v56 = vpop.f32.mrb[1].mxu0  ;;  %v1600_v11 = vpop.f32.mrb[5].mxu1 }
 0x29e   : > { %v1963_v62 = vadd.f32 %v1594_v56, %v863_v42  ;;  %v1967_v51 = vadd.f32 %v1966_v24, %v1600_v11 }
 0x29f   : > { %v1621_v50 = vadd.f32 %v1965_v19, %v1617_v43  ;;  %v1619_v63 = vadd.f32 %v1962_v23, %v1612_v54 }
 0x2a0   : > { %v1622_v47 = vadd.f32 %v1967_v51, %v1617_v43  ;;  %v1620_v14 = vadd.f32 %v1963_v62, %v1612_v54 }
 0x2a1   : > { %1625 = vst [vmem:[%s303_s8 + $0x10] sm:$0xff] %v1621_v50  ;;  %1623 = vst [vmem:[%s303_s8] sm:$0xff] %v1619_v63 }
 0x2a2   : > { %1626 = vst [vmem:[%s303_s8 + $0x18] sm:$0xff] %v1622_v47  ;;  %1624 = vst [vmem:[%s303_s8 + $0x8] sm:$0xff] %v1620_v14 }
 0x2a3   : > { %2654 = shalt.err (!%p2651_p10)
}
 0x2a4   : > { %s2655_s28 = scalar_lea.hbm %s3575_s13, 512  ;;  %s2659_s25 = scalar_lea.hbm %s3628_s4, 1024 }
 0x2a5   : > { %p2656_p13 = scmp.ne.s32.totalorder %s3575_s13, %s2655_s28  ;;  %p2660_p11 = scmp.lt.u32.totalorder %s3575_s13, %s3628_s4 }
 0x2a6   : > { %p2661_p9 = scmp.lt.u32.totalorder %s2659_s25, %s2655_s28  ;;  %p2663_p3 = scmp.lt.u32.totalorder %s2655_s28, %s3575_s13 }
 0x2a7   : > { %p2657_p5 = pnand %p2656_p13, %p3708_p7 }
 0x2a8   : > { %p2662_p1 = por %p2661_p9, %p2660_p11 }
 0x2a9   : > { %p2658_p12 = pneg %p2657_p5 }
 0x2aa   : > { %p2664_p8 = por %p2663_p3, %p2662_p1 }
 0x2ac   : > { %p2665_p0 = pnand %p2664_p8, %p2658_p12 }
 0x2ae   : > { %2668 = shalt.err (!%p2665_p0)
}
 0x2af   : > { %s2748_s24 = smov 256   ;;  %s2749_s5 = smov 16  }
 0x2b0   : > { %1987 = dma.vmem_to_hbm [thread:$0]  (%p3708_p7), %s3570_s22, 512, %s3575_s13, %s1628_s18, %s2748_s24, %s2748_s24, %s2749_s5  }
 0x2b1 PF: > { %s3709_s0 = sld [smem:[#allocation14_spill]]  ;;  %s1658_s11 = sand.u32 1, %s2711_s15  }
 0x2b2   : > { %p3711_p6 = scmp.ge.s32.totalorder %s2731_s20, 2  ;;  %s1659_s9 = scalar_lea.sflag [#allocation4], %s1658_s11 }
 0x2b7   : > { %p3710_p4 = scmp.ne.s32.totalorder %s3709_s0, 0 }
 0x2b9   : > { %p2001_p2 = pnand %p3711_p6, %p3710_p4 }
 0x2bb   : > { %2706 = dma.done.wait (!%p2001_p2), %s1659_s9, 512  }
 0x2bc   : > { %2708 = vsyncadd (!%p2001_p2), %s1659_s9, 4294966784  ;;  %s23_s20 = sadd.s32 1, %s2731_s20   ;;  %s3712_s8 = sld [smem:[#allocation13_spill]] }
 0x2bd   : > { %p20_p10 = scmp.ge.s32.totalorder %s23_s20, 4   ;;  %s3713_s17 = sld [smem:[#allocation16_spill]] }
 0x2be   : > { %s3714_s26 = sld [smem:[#allocation15_spill]]  ;;  %s3715_s15 = smov %s2715_s16 }
 0x2bf   : > { %s3717_s18 = smov %s2727_s19  ;;  %22 = sbr.rel (!%p20_p10) target bundleno = 11 (0xb), region = 102 }
 0x2c2   : > { %s3716_s16 = smov %s3712_s8 }
 0x2c4   : > { %s3718_s19 = smov %s3714_s26 }
 0x2c6   :  { %1664 = vsyncpa [#allocation3], 1 }
 0x2c7   :  { %1666 = vsyncpa [#allocation3 + $0x1], 1 }
 0x2c8   :  { %1667 = vsyncpa [#allocation6], 1 }
 0x2c9   :  { %1669 = vsyncpa [#allocation6 + $0x1], 1 }
 0x2ca   :  { %1670 = vsyncpa [#allocation4], 1 }
 0x2cb   :  { %1672 = vsyncpa [#allocation4 + $0x1], 1 }

</bundles_post_ra>
